<compile_context>
chip_gen: v7x
topology: tpu7x:2x2x1
jax: 0.10.0
libtpu: 0.0.40
codegen_flags: <defaults>
</compile_context>

<pallas_src>
import functools

import jax
import jax.numpy as jnp
from jax.experimental import pallas as pl
from jax.experimental.pallas import tpu as pltpu


# ----------------------------------------------------------------------------
# Padding helpers.  Zero padding is benign:
#  * padded hidden (gate) columns have zero weights AND zero bias, so those
#    columns of c/h stay exactly 0 through the recurrence;
#  * padded batch rows DO pick up the bias (x rows are 0 but +b is added), so
#    their h/c become nonzero -- that is fine because batch rows are independent
#    and the padded rows are sliced off at the end (do not rely on them being 0);
#  * padded timesteps are skipped entirely by the kernel's ragged-tail loop.
# ----------------------------------------------------------------------------
def _round_up(n, m):
    return (n + m - 1) // m * m


def _pad_gate_axis(w, H, Hp):
    """Pad the trailing 4H gate axis (per [i,f,g,o] block) to 4*Hp with zeros."""
    lead = w.shape[:-1]
    w4 = w.reshape(lead + (4, H))
    out = jnp.zeros(lead + (4, Hp), w.dtype).at[..., :H].set(w4)
    return out.reshape(lead + (4 * Hp,))


def _pad_rows(w, rows):
    pad = rows - w.shape[0]
    if pad == 0:
        return w
    return jnp.pad(w, ((0, pad),) + ((0, 0),) * (w.ndim - 1))


# ----------------------------------------------------------------------------
# VMEM budgeting (per-generation: v5e/v6e have 128 MiB/TC, v7x only 64 MiB/TC).
# ----------------------------------------------------------------------------
def _vmem_capacity_bytes():
    try:
        return int(pltpu.get_tpu_info().vmem_capacity_bytes)
    except Exception:
        return 128 * 1024 * 1024


def _estimate_vmem_bytes(TT, Bp, Hp, Dp):
    G = 4 * Hp
    rows = TT * Bp
    b_x = 2 * rows * Dp * 2          # streamed x block, double-buffered, bf16
    b_y = 2 * rows * Hp * 2          # streamed y block, double-buffered, bf16
    b_w = (Dp + Hp) * G * 2          # W_ih + W_hh: single resident VMEM copy (bf16)
    b_gx = rows * G * 4              # per-block input gates scratch, f32
    b_small = 2 * G * 4 + 8 * Bp * Hp * 4 + Bp * Hp * 6   # bias, h0/c0, hT/cT, h/c
    return b_x + b_y + b_w + b_gx + b_small


def _pick_vmem_limit(est_bytes, cap):
    ceiling = int(cap * 0.85)                       # leave headroom below physical
    want = int(est_bytes * 1.3) + (2 << 20)
    return min(ceiling, max(32 * 1024 * 1024, want))


# ----------------------------------------------------------------------------
# Pallas kernel: one LSTM layer.  Grid = (num_time_blocks,) ["arbitrary"].
# Activations are 2-D slabs (Tp*Bp, D) so every block is lane/sublane aligned.
# State (h bf16, c f32) is carried across time blocks in VMEM scratch.
# ----------------------------------------------------------------------------
def _lstm_layer_kernel(x_ref, wih_hbm, b_ref, whh_hbm, h0_ref, c0_ref,
                       y_ref, hT_ref, cT_ref,
                       wih_sc, whh_sc, gx_sc, h_sc, c_sc,
                       *, hidden, bp, time_block, seq_len, num_time_blocks,
                       unroll):
    tb = pl.program_id(0)

    @pl.when(tb == 0)
    def _():
        # One-time copy of the resident weights into single-buffered VMEM
        # (avoids the default 2x BlockSpec double-buffering of ~MiB weights).
        pltpu.sync_copy(wih_hbm, wih_sc)
        pltpu.sync_copy(whh_hbm, whh_sc)
        h_sc[...] = h0_ref[...].astype(jnp.bfloat16)
        c_sc[...] = c0_ref[...]

    # Fused input projection for the whole time block: M = time_block*Bp rows.
    # Stays in VMEM -> no (T,B,4H) HBM round trip.
    gx_sc[...] = jnp.dot(x_ref[...], wih_sc[...],
                         preferred_element_type=jnp.float32) + b_ref[...]

    def step(t, carry):
        row = pl.multiple_of(t * bp, bp)
        gates = gx_sc[pl.ds(row, bp), :] + jnp.dot(
            h_sc[...], whh_sc[...], preferred_element_type=jnp.float32)
        # lane-aligned static gate slices (hidden is a multiple of 128)
        i_g = jax.nn.sigmoid(gates[:, 0 * hidden:1 * hidden])
        f_g = jax.nn.sigmoid(gates[:, 1 * hidden:2 * hidden])
        g_g = jnp.tanh(gates[:, 2 * hidden:3 * hidden])
        o_g = jax.nn.sigmoid(gates[:, 3 * hidden:4 * hidden])
        c_new = f_g * c_sc[...] + i_g * g_g
        h_new = (o_g * jnp.tanh(c_new)).astype(jnp.bfloat16)
        c_sc[...] = c_new
        h_sc[...] = h_new
        y_ref[pl.ds(row, bp), :] = h_new
        return carry

    # Ragged final time block: run a (static) shorter trip count instead of
    # executing padded steps and masking them -- no wasted MXU/EUP work.
    tail = seq_len - (num_time_blocks - 1) * time_block   # static, in (0, TB]
    if tail == time_block:
        jax.lax.fori_loop(0, time_block, step, 0, unroll=unroll)
    else:
        @pl.when(tb < num_time_blocks - 1)
        def _():
            jax.lax.fori_loop(0, time_block, step, 0, unroll=unroll)

        @pl.when(tb == num_time_blocks - 1)
        def _():
            jax.lax.fori_loop(0, tail, step, 0, unroll=min(unroll, tail))

    @pl.when(tb == num_time_blocks - 1)
    def _():
        hT_ref[...] = h_sc[...].astype(hT_ref.dtype)
        cT_ref[...] = c_sc[...]


def lstm_layer_pallas(x, w_ih, bias, w_hh, h0, c0, *, seq_len, time_block,
                      vmem_limit):
    """x: (Tp*Bp, Dp) bf16 time-major slab; w_ih: (Dp, 4Hp) bf16; bias: (1, 4Hp)
    f32; w_hh: (Hp, 4Hp) bf16; h0, c0: (Bp, Hp) f32.
    Returns (y (Tp*Bp, Hp) bf16, hT (Bp, Hp) f32, cT (Bp, Hp) f32)."""
    rows, Dp = x.shape
    Bp, Hp = h0.shape
    G = 4 * Hp
    Tp = rows // Bp
    assert Tp % time_block == 0
    NT = Tp // time_block
    unroll = min(8, time_block)

    kernel = functools.partial(
        _lstm_layer_kernel, hidden=Hp, bp=Bp, time_block=time_block,
        seq_len=seq_len, num_time_blocks=NT, unroll=unroll)

    grid_spec = pltpu.PrefetchScalarGridSpec(
        num_scalar_prefetch=0,
        grid=(NT,),
        in_specs=[
            pl.BlockSpec((time_block * Bp, Dp), lambda t: (t, 0)),  # x (streamed)
            pl.BlockSpec(memory_space=pl.ANY),                      # W_ih (HBM)
            pl.BlockSpec((1, G), lambda t: (0, 0)),                 # bias
            pl.BlockSpec(memory_space=pl.ANY),                      # W_hh (HBM)
            pl.BlockSpec((Bp, Hp), lambda t: (0, 0)),               # h0
            pl.BlockSpec((Bp, Hp), lambda t: (0, 0)),               # c0
        ],
        out_specs=(
            pl.BlockSpec((time_block * Bp, Hp), lambda t: (t, 0)),  # y (bf16)
            pl.BlockSpec((Bp, Hp), lambda t: (0, 0)),               # h_T
            pl.BlockSpec((Bp, Hp), lambda t: (0, 0)),               # c_T
        ),
        scratch_shapes=[
            pltpu.VMEM((Dp, G), jnp.bfloat16),                 # W_ih, single copy
            pltpu.VMEM((Hp, G), jnp.bfloat16),                 # W_hh, single copy
            pltpu.VMEM((time_block * Bp, G), jnp.float32),     # per-block gates_x
            pltpu.VMEM((Bp, Hp), jnp.bfloat16),                # h carry
            pltpu.VMEM((Bp, Hp), jnp.float32),                 # c carry
        ],
    )

    return pl.pallas_call(
        kernel,
        out_shape=(
            jax.ShapeDtypeStruct((rows, Hp), jnp.bfloat16),
            jax.ShapeDtypeStruct((Bp, Hp), jnp.float32),
            jax.ShapeDtypeStruct((Bp, Hp), jnp.float32),
        ),
        grid_spec=grid_spec,
        compiler_params=pltpu.CompilerParams(
            dimension_semantics=("arbitrary",),
            vmem_limit_bytes=vmem_limit),
    )(x, w_ih, bias, w_hh, h0, c0)


# ----------------------------------------------------------------------------
# Full RNNModel forward (eval mode): embedding lookup (glue gather in plain
# JAX), stacked fused-LSTM Pallas layers, flatten to (T*B, H).
# ----------------------------------------------------------------------------
def rnn_model_forward(params, tokens, hidden, *, time_block=32):
    # tokens: (T, B) int32
    T, B = tokens.shape
    emb = jnp.take(params["encoder"], tokens, axis=0)   # (T, B, ninp) glue gather
    # dropoute/dropouti/dropouth/dropout/WeightDrop = identity in eval mode

    H = params["lstm"][0][1].shape[0]                   # nhid (no weight tying)
    Hp = _round_up(H, 128)
    Bp = _round_up(B, 16)        # 16 keeps bf16 (16,128) tiles per-timestep aligned
    ninp = emb.shape[-1]
    Dp0 = _round_up(ninp, 128)

    # per-generation time-block / VMEM budget
    cap = _vmem_capacity_bytes()
    TT = max(1, min(time_block, T))
    while TT > 8 and _estimate_vmem_bytes(TT, Bp, Hp, max(Dp0, Hp)) > int(0.7 * cap):
        TT = max(8, TT // 2)
    Tp = _round_up(T, TT)
    vmem_limit = _pick_vmem_limit(
        _estimate_vmem_bytes(TT, Bp, Hp, max(Dp0, Hp)), cap)

    # pad once, flatten to a time-major 2-D slab; everything stays padded/flat
    x = jnp.zeros((Tp, Bp, Dp0), jnp.bfloat16)
    x = x.at[:T, :B, :ninp].set(emb.astype(jnp.bfloat16))
    x = x.reshape(Tp * Bp, Dp0)

    new_hidden = []
    din_p = Dp0
    for layer_idx, (w_ih, w_hh, b) in enumerate(params["lstm"]):
        w_ih_p = _pad_rows(_pad_gate_axis(w_ih, H, Hp), din_p).astype(jnp.bfloat16)
        w_hh_p = _pad_rows(_pad_gate_axis(w_hh, H, Hp), Hp).astype(jnp.bfloat16)
        b_p = _pad_gate_axis(b, H, Hp).reshape(1, 4 * Hp)           # f32

        h0, c0 = hidden[layer_idx]                                  # (1, B, H) each
        h0p = jnp.zeros((Bp, Hp), jnp.float32).at[:B, :H].set(h0[0])
        c0p = jnp.zeros((Bp, Hp), jnp.float32).at[:B, :H].set(c0[0])

        y, hT, cT = lstm_layer_pallas(x, w_ih_p, b_p, w_hh_p, h0p, c0p,
                                      seq_len=T, time_block=TT,
                                      vmem_limit=vmem_limit)
        new_hidden.append((hT[:B, :H][None], cT[:B, :H][None]))
        x = y                     # (Tp*Bp, Hp) bf16; dropouth = identity (eval)
        din_p = Hp

    out = x.reshape(Tp, Bp, Hp)[:T, :B, :H].astype(jnp.float32)
    return out.reshape(T * B, H), new_hidden


# ----------------------------------------------------------------------------
# Pure-JAX f32 reference (lax.scan LSTM) for correctness checking.
# ----------------------------------------------------------------------------
def lstm_layer_ref(x, w_ih, w_hh, b, h0, c0):
    H = h0.shape[-1]

    def step(carry, xt):
        h, c = carry
        gates = xt @ w_ih + h @ w_hh + b
        i = jax.nn.sigmoid(gates[:, :H])
        f = jax.nn.sigmoid(gates[:, H:2 * H])
        g = jnp.tanh(gates[:, 2 * H:3 * H])
        o = jax.nn.sigmoid(gates[:, 3 * H:])
        c = f * c + i * g
        h = o * jnp.tanh(c)
        return (h, c), h

    (hT, cT), ys = jax.lax.scan(step, (h0, c0), x)
    return ys, hT, cT


def rnn_model_forward_ref(params, tokens, hidden):
    emb = jnp.take(params["encoder"], tokens, axis=0)
    out = emb
    new_hidden = []
    for layer_idx, (w_ih, w_hh, b) in enumerate(params["lstm"]):
        h0, c0 = hidden[layer_idx]
        out, hT, cT = lstm_layer_ref(out, w_ih, w_hh, b, h0[0], c0[0])
        new_hidden.append((hT[None], cT[None]))
    T, B, H = out.shape
    return out.reshape(T * B, H), new_hidden


# ----------------------------------------------------------------------------
# Deterministic parameter construction (matches module __init__ shapes).
# rnn_type='LSTM', tie_weights=False, use_ind=False  ->  all layers hidden=nhid.
# ----------------------------------------------------------------------------
def init_params(key, ntoken, ninp, nhid, nlayers):
    initrange = 0.1
    keys = jax.random.split(key, 3 + 4 * nlayers)
    params = {}
    params["encoder"] = jax.random.uniform(
        keys[0], (ntoken, ninp), jnp.float32, -initrange, initrange)
    lstm = []
    for l in range(nlayers):
        d_in = ninp if l == 0 else nhid
        h = nhid
        bound = 1.0 / jnp.sqrt(h)
        k = keys[3 + 4 * l: 3 + 4 * (l + 1)]
        w_ih = jax.random.uniform(k[0], (d_in, 4 * h), jnp.float32, -bound, bound)
        w_hh = jax.random.uniform(k[1], (h, 4 * h), jnp.float32, -bound, bound)
        b_ih = jax.random.uniform(k[2], (4 * h,), jnp.float32, -bound, bound)
        b_hh = jax.random.uniform(k[3], (4 * h,), jnp.float32, -bound, bound)
        lstm.append((w_ih, w_hh, b_ih + b_hh))
    params["lstm"] = lstm
    # decoder weights exist in the module but are unused by forward()
    params["decoder_w"] = jax.random.uniform(
        keys[1], (ntoken, nhid), jnp.float32, -initrange, initrange)
    params["decoder_b"] = jnp.zeros((ntoken,), jnp.float32)
    return params


def init_hidden(nlayers, bsz, nhid):
    return [(jnp.zeros((1, bsz, nhid), jnp.float32),
             jnp.zeros((1, bsz, nhid), jnp.float32)) for _ in range(nlayers)]


if __name__ == "__main__":
    ntoken, ninp, nhid, nlayers = 50, 32, 32, 2
    T, B = 8, 2

    key = jax.random.PRNGKey(0)
    k_param, k_tok = jax.random.split(key)
    params = init_params(k_param, ntoken, ninp, nhid, nlayers)
    tokens = jax.random.randint(k_tok, (T, B), 0, ntoken, dtype=jnp.int32)
    hidden = init_hidden(nlayers, B, nhid)

    # main path: single time block (T <= time_block)
    forward = jax.jit(functools.partial(rnn_model_forward, time_block=32))
    result, new_hidden = forward(params, tokens, hidden)
    result = jax.block_until_ready(result)
    jax.tree_util.tree_map(jax.block_until_ready, new_hidden)

    # correctness check vs pure-JAX f32 reference (bf16 matmuls / bf16 h, y)
    result_ref, hidden_ref = rnn_model_forward_ref(params, tokens, hidden)
    assert result.shape == (T * B, nhid)
    assert jnp.allclose(result, result_ref, rtol=3e-2, atol=3e-2), \
        "output mismatch vs reference"
    for (h, c), (hr, cr) in zip(new_hidden, hidden_ref):
        assert h.shape == hr.shape and c.shape == cr.shape
        assert jnp.allclose(h, hr, rtol=3e-2, atol=3e-2), "hidden h mismatch"
        assert jnp.allclose(c, cr, rtol=3e-2, atol=3e-2), "hidden c mismatch"

    # also exercise the multi-time-block + ragged-tail path (T=8, time_block=3)
    forward_ragged = jax.jit(functools.partial(rnn_model_forward, time_block=3))
    result2, new_hidden2 = forward_ragged(params, tokens, hidden)
    result2 = jax.block_until_ready(result2)
    assert jnp.allclose(result2, result_ref, rtol=3e-2, atol=3e-2), \
        "ragged-path output mismatch vs reference"
    for (h, c), (hr, cr) in zip(new_hidden2, hidden_ref):
        assert jnp.allclose(h, hr, rtol=3e-2, atol=3e-2), "ragged hidden h mismatch"
        assert jnp.allclose(c, cr, rtol=3e-2, atol=3e-2), "ragged hidden c mismatch"

    print("KERNEL_OK")
</pallas_src>

<mosaic_0001>
module attributes {stable_mosaic.version = 11 : i64} {
  func.func @_lstm_layer_kernel(%arg0: i32, %arg1: memref<128x128xbf16, #tpu.memory_space<vmem>>, %arg2: memref<128x512xbf16, #tpu.memory_space<any>>, %arg3: memref<1x512xf32, #tpu.memory_space<vmem>>, %arg4: memref<128x512xbf16, #tpu.memory_space<any>>, %arg5: memref<16x128xf32, #tpu.memory_space<vmem>>, %arg6: memref<16x128xf32, #tpu.memory_space<vmem>>, %arg7: memref<128x128xbf16, #tpu.memory_space<vmem>>, %arg8: memref<16x128xf32, #tpu.memory_space<vmem>>, %arg9: memref<16x128xf32, #tpu.memory_space<vmem>>, %arg10: memref<128x512xbf16, #tpu.memory_space<vmem>>, %arg11: memref<128x512xbf16, #tpu.memory_space<vmem>>, %arg12: memref<128x512xf32, #tpu.memory_space<vmem>>, %arg13: memref<16x128xbf16, #tpu.memory_space<vmem>>, %arg14: memref<16x128xf32, #tpu.memory_space<vmem>>) attributes {dimension_semantics = [#tpu.dimension_semantics<arbitrary>], iteration_bounds = array<i64: 1>, scalar_prefetch = 0 : i64, scratch_operands = 5 : i64, tpu.core_type = #tpu.core_type<tc>, window_params = [{transform_indices = @transform_0, window_bounds = array<i64: 128, 128>}, {}, {pipeline_mode = #tpu.pipeline_mode<synchronous>, transform_indices = @transform_2, window_bounds = array<i64: 1, 512>}, {}, {pipeline_mode = #tpu.pipeline_mode<synchronous>, transform_indices = @transform_4, window_bounds = array<i64: 16, 128>}, {pipeline_mode = #tpu.pipeline_mode<synchronous>, transform_indices = @transform_5, window_bounds = array<i64: 16, 128>}, {transform_indices = @transform_6, window_bounds = array<i64: 128, 128>}, {pipeline_mode = #tpu.pipeline_mode<synchronous>, transform_indices = @transform_7, window_bounds = array<i64: 16, 128>}, {pipeline_mode = #tpu.pipeline_mode<synchronous>, transform_indices = @transform_8, window_bounds = array<i64: 16, 128>}]} {
    %c0_i32 = arith.constant 0 : i32
    %0 = arith.cmpi eq, %arg0, %c0_i32 : i32
    %1 = arith.extui %0 : i1 to i32
    %c0_i32_0 = arith.constant 0 : i32
    %2 = arith.cmpi ne, %1, %c0_i32_0 : i32
    scf.if %2 {
      "tpu.region"() ({
        %330 = tpu.sem_alloc : memref<!tpu.dma_semaphore, #tpu.memory_space<semaphore_mem>>
        tpu.enqueue_dma source(%arg2 : memref<128x512xbf16, #tpu.memory_space<any>>) target(%arg10 : memref<128x512xbf16, #tpu.memory_space<vmem>>) target_semaphore(%330 : memref<!tpu.dma_semaphore, #tpu.memory_space<semaphore_mem>>)
        tpu.wait_dma2 semaphore(%330 : memref<!tpu.dma_semaphore, #tpu.memory_space<semaphore_mem>>) src(%arg2 : memref<128x512xbf16, #tpu.memory_space<any>>) dst(%arg10 : memref<128x512xbf16, #tpu.memory_space<vmem>>)
        tpu.yield
      }) : () -> ()
      "tpu.region"() ({
        %330 = tpu.sem_alloc : memref<!tpu.dma_semaphore, #tpu.memory_space<semaphore_mem>>
        tpu.enqueue_dma source(%arg4 : memref<128x512xbf16, #tpu.memory_space<any>>) target(%arg11 : memref<128x512xbf16, #tpu.memory_space<vmem>>) target_semaphore(%330 : memref<!tpu.dma_semaphore, #tpu.memory_space<semaphore_mem>>)
        tpu.wait_dma2 semaphore(%330 : memref<!tpu.dma_semaphore, #tpu.memory_space<semaphore_mem>>) src(%arg4 : memref<128x512xbf16, #tpu.memory_space<any>>) dst(%arg11 : memref<128x512xbf16, #tpu.memory_space<vmem>>)
        tpu.yield
      }) : () -> ()
      %c0_146 = arith.constant 0 : index
      %c0_147 = arith.constant 0 : index
      %325 = vector.load %arg5[%c0_146, %c0_147] : memref<16x128xf32, #tpu.memory_space<vmem>>, vector<16x128xf32>
      %326 = arith.truncf %325 : vector<16x128xf32> to vector<16x128xbf16>
      %c0_148 = arith.constant 0 : index
      %c0_149 = arith.constant 0 : index
      %327 = vector.load %arg13[%c0_148, %c0_149] : memref<16x128xbf16, #tpu.memory_space<vmem>>, vector<16x128xbf16>
      tpu.vector_store %arg13[%c0_148, %c0_149], %326 {strides = array<i32>} : memref<16x128xbf16, #tpu.memory_space<vmem>>, vector<16x128xbf16>,
      %c0_150 = arith.constant 0 : index
      %c0_151 = arith.constant 0 : index
      %328 = vector.load %arg6[%c0_150, %c0_151] : memref<16x128xf32, #tpu.memory_space<vmem>>, vector<16x128xf32>
      %c0_152 = arith.constant 0 : index
      %c0_153 = arith.constant 0 : index
      %329 = vector.load %arg14[%c0_152, %c0_153] : memref<16x128xf32, #tpu.memory_space<vmem>>, vector<16x128xf32>
      tpu.vector_store %arg14[%c0_152, %c0_153], %328 {strides = array<i32>} : memref<16x128xf32, #tpu.memory_space<vmem>>, vector<16x128xf32>,
    } else {
    }
    %c0 = arith.constant 0 : index
    %c0_1 = arith.constant 0 : index
    %3 = vector.load %arg1[%c0, %c0_1] : memref<128x128xbf16, #tpu.memory_space<vmem>>, vector<128x128xbf16>
    %c0_2 = arith.constant 0 : index
    %c0_3 = arith.constant 0 : index
    %4 = vector.load %arg10[%c0_2, %c0_3] : memref<128x512xbf16, #tpu.memory_space<vmem>>, vector<128x512xbf16>
    %cst = arith.constant dense<0.000000e+00> : vector<128x512xf32>
    %5 = tpu.matmul %3, %4, %cst {dimension_numbers = #tpu.dot_dimension_numbers<[1], [0], [0], [1], [0, 0, 1, 1], [], []>} : vector<128x128xbf16>, vector<128x512xbf16>, vector<128x512xf32> -> vector<128x512xf32>
    %c0_4 = arith.constant 0 : index
    %c0_5 = arith.constant 0 : index
    %6 = vector.load %arg3[%c0_4, %c0_5] : memref<1x512xf32, #tpu.memory_space<vmem>>, vector<1x512xf32>
    %7 = vector.broadcast %6 : vector<1x512xf32> to vector<128x512xf32>
    %8 = arith.addf %5, %7 : vector<128x512xf32>
    %c0_6 = arith.constant 0 : index
    %c0_7 = arith.constant 0 : index
    %9 = vector.load %arg12[%c0_6, %c0_7] : memref<128x512xf32, #tpu.memory_space<vmem>>, vector<128x512xf32>
    tpu.vector_store %arg12[%c0_6, %c0_7], %8 {strides = array<i32>} : memref<128x512xf32, #tpu.memory_space<vmem>>, vector<128x512xf32>,
    %c0_i32_8 = arith.constant 0 : i32
    %c16_i32 = arith.constant 16 : i32
    %10 = arith.muli %c0_i32_8, %c16_i32 : i32
    %11 = tpu.assume_multiple %10, 16 : i32
    %12 = arith.index_cast %11 : i32 to index
    %c0_9 = arith.constant 0 : index
    %13 = vector.load %arg12[%12, %c0_9] : memref<128x512xf32, #tpu.memory_space<vmem>>, vector<16x512xf32>
    %c0_10 = arith.constant 0 : index
    %c0_11 = arith.constant 0 : index
    %14 = vector.load %arg13[%c0_10, %c0_11] : memref<16x128xbf16, #tpu.memory_space<vmem>>, vector<16x128xbf16>
    %c0_12 = arith.constant 0 : index
    %c0_13 = arith.constant 0 : index
    %15 = vector.load %arg11[%c0_12, %c0_13] : memref<128x512xbf16, #tpu.memory_space<vmem>>, vector<128x512xbf16>
    %cst_14 = arith.constant dense<0.000000e+00> : vector<16x512xf32>
    %16 = tpu.matmul %14, %15, %cst_14 {dimension_numbers = #tpu.dot_dimension_numbers<[1], [0], [0], [1], [0, 0, 1, 1], [], []>} : vector<16x128xbf16>, vector<128x512xbf16>, vector<16x512xf32> -> vector<16x512xf32>
    %17 = arith.addf %13, %16 : vector<16x512xf32>
    %18 = vector.extract_strided_slice %17 {offsets = [0, 0], sizes = [16, 128], strides = [1, 1]} : vector<16x512xf32> to vector<16x128xf32>
    %19 = arith.negf %18 : vector<16x128xf32>
    %20 = math.exp %19 : vector<16x128xf32>
    %cst_15 = arith.constant 1.000000e+00 : f32
    %21 = vector.broadcast %cst_15 : f32 to vector<16x128xf32>
    %22 = arith.addf %21, %20 : vector<16x128xf32>
    %23 = arith.divf %21, %22 : vector<16x128xf32>
    %24 = vector.extract_strided_slice %17 {offsets = [0, 128], sizes = [16, 128], strides = [1, 1]} : vector<16x512xf32> to vector<16x128xf32>
    %25 = arith.negf %24 : vector<16x128xf32>
    %26 = math.exp %25 : vector<16x128xf32>
    %cst_16 = arith.constant 1.000000e+00 : f32
    %27 = vector.broadcast %cst_16 : f32 to vector<16x128xf32>
    %28 = arith.addf %27, %26 : vector<16x128xf32>
    %29 = arith.divf %27, %28 : vector<16x128xf32>
    %30 = vector.extract_strided_slice %17 {offsets = [0, 256], sizes = [16, 128], strides = [1, 1]} : vector<16x512xf32> to vector<16x128xf32>
    %31 = math.tanh %30 : vector<16x128xf32>
    %32 = vector.extract_strided_slice %17 {offsets = [0, 384], sizes = [16, 128], strides = [1, 1]} : vector<16x512xf32> to vector<16x128xf32>
    %33 = arith.negf %32 : vector<16x128xf32>
    %34 = math.exp %33 : vector<16x128xf32>
    %cst_17 = arith.constant 1.000000e+00 : f32
    %35 = vector.broadcast %cst_17 : f32 to vector<16x128xf32>
    %36 = arith.addf %35, %34 : vector<16x128xf32>
    %37 = arith.divf %35, %36 : vector<16x128xf32>
    %c0_18 = arith.constant 0 : index
    %c0_19 = arith.constant 0 : index
    %38 = vector.load %arg14[%c0_18, %c0_19] : memref<16x128xf32, #tpu.memory_space<vmem>>, vector<16x128xf32>
    %39 = arith.mulf %29, %38 : vector<16x128xf32>
    %40 = arith.mulf %23, %31 : vector<16x128xf32>
    %41 = arith.addf %39, %40 : vector<16x128xf32>
    %42 = math.tanh %41 : vector<16x128xf32>
    %43 = arith.mulf %37, %42 : vector<16x128xf32>
    %44 = arith.truncf %43 : vector<16x128xf32> to vector<16x128xbf16>
    %c0_20 = arith.constant 0 : index
    %c0_21 = arith.constant 0 : index
    %45 = vector.load %arg14[%c0_20, %c0_21] : memref<16x128xf32, #tpu.memory_space<vmem>>, vector<16x128xf32>
    tpu.vector_store %arg14[%c0_20, %c0_21], %41 {strides = array<i32>} : memref<16x128xf32, #tpu.memory_space<vmem>>, vector<16x128xf32>,
    %c0_22 = arith.constant 0 : index
    %c0_23 = arith.constant 0 : index
    %46 = vector.load %arg13[%c0_22, %c0_23] : memref<16x128xbf16, #tpu.memory_space<vmem>>, vector<16x128xbf16>
    tpu.vector_store %arg13[%c0_22, %c0_23], %44 {strides = array<i32>} : memref<16x128xbf16, #tpu.memory_space<vmem>>, vector<16x128xbf16>,
    %47 = arith.index_cast %11 : i32 to index
    %c0_24 = arith.constant 0 : index
    %48 = vector.load %arg7[%47, %c0_24] : memref<128x128xbf16, #tpu.memory_space<vmem>>, vector<16x128xbf16>
    tpu.vector_store %arg7[%47, %c0_24], %44 {strides = array<i32>} : memref<128x128xbf16, #tpu.memory_space<vmem>>, vector<16x128xbf16>,
    %c1_i32 = arith.constant 1 : i32
    %c16_i32_25 = arith.constant 16 : i32
    %49 = arith.muli %c1_i32, %c16_i32_25 : i32
    %50 = tpu.assume_multiple %49, 16 : i32
    %51 = arith.index_cast %50 : i32 to index
    %c0_26 = arith.constant 0 : index
    %52 = vector.load %arg12[%51, %c0_26] : memref<128x512xf32, #tpu.memory_space<vmem>>, vector<16x512xf32>
    %c0_27 = arith.constant 0 : index
    %c0_28 = arith.constant 0 : index
    %53 = vector.load %arg13[%c0_27, %c0_28] : memref<16x128xbf16, #tpu.memory_space<vmem>>, vector<16x128xbf16>
    %c0_29 = arith.constant 0 : index
    %c0_30 = arith.constant 0 : index
    %54 = vector.load %arg11[%c0_29, %c0_30] : memref<128x512xbf16, #tpu.memory_space<vmem>>, vector<128x512xbf16>
    %cst_31 = arith.constant dense<0.000000e+00> : vector<16x512xf32>
    %55 = tpu.matmul %53, %54, %cst_31 {dimension_numbers = #tpu.dot_dimension_numbers<[1], [0], [0], [1], [0, 0, 1, 1], [], []>} : vector<16x128xbf16>, vector<128x512xbf16>, vector<16x512xf32> -> vector<16x512xf32>
    %56 = arith.addf %52, %55 : vector<16x512xf32>
    %57 = vector.extract_strided_slice %56 {offsets = [0, 0], sizes = [16, 128], strides = [1, 1]} : vector<16x512xf32> to vector<16x128xf32>
    %58 = arith.negf %57 : vector<16x128xf32>
    %59 = math.exp %58 : vector<16x128xf32>
    %cst_32 = arith.constant 1.000000e+00 : f32
    %60 = vector.broadcast %cst_32 : f32 to vector<16x128xf32>
    %61 = arith.addf %60, %59 : vector<16x128xf32>
    %62 = arith.divf %60, %61 : vector<16x128xf32>
    %63 = vector.extract_strided_slice %56 {offsets = [0, 128], sizes = [16, 128], strides = [1, 1]} : vector<16x512xf32> to vector<16x128xf32>
    %64 = arith.negf %63 : vector<16x128xf32>
    %65 = math.exp %64 : vector<16x128xf32>
    %cst_33 = arith.constant 1.000000e+00 : f32
    %66 = vector.broadcast %cst_33 : f32 to vector<16x128xf32>
    %67 = arith.addf %66, %65 : vector<16x128xf32>
    %68 = arith.divf %66, %67 : vector<16x128xf32>
    %69 = vector.extract_strided_slice %56 {offsets = [0, 256], sizes = [16, 128], strides = [1, 1]} : vector<16x512xf32> to vector<16x128xf32>
    %70 = math.tanh %69 : vector<16x128xf32>
    %71 = vector.extract_strided_slice %56 {offsets = [0, 384], sizes = [16, 128], strides = [1, 1]} : vector<16x512xf32> to vector<16x128xf32>
    %72 = arith.negf %71 : vector<16x128xf32>
    %73 = math.exp %72 : vector<16x128xf32>
    %cst_34 = arith.constant 1.000000e+00 : f32
    %74 = vector.broadcast %cst_34 : f32 to vector<16x128xf32>
    %75 = arith.addf %74, %73 : vector<16x128xf32>
    %76 = arith.divf %74, %75 : vector<16x128xf32>
    %c0_35 = arith.constant 0 : index
    %c0_36 = arith.constant 0 : index
    %77 = vector.load %arg14[%c0_35, %c0_36] : memref<16x128xf32, #tpu.memory_space<vmem>>, vector<16x128xf32>
    %78 = arith.mulf %68, %77 : vector<16x128xf32>
    %79 = arith.mulf %62, %70 : vector<16x128xf32>
    %80 = arith.addf %78, %79 : vector<16x128xf32>
    %81 = math.tanh %80 : vector<16x128xf32>
    %82 = arith.mulf %76, %81 : vector<16x128xf32>
    %83 = arith.truncf %82 : vector<16x128xf32> to vector<16x128xbf16>
    %c0_37 = arith.constant 0 : index
    %c0_38 = arith.constant 0 : index
    %84 = vector.load %arg14[%c0_37, %c0_38] : memref<16x128xf32, #tpu.memory_space<vmem>>, vector<16x128xf32>
    tpu.vector_store %arg14[%c0_37, %c0_38], %80 {strides = array<i32>} : memref<16x128xf32, #tpu.memory_space<vmem>>, vector<16x128xf32>,
    %c0_39 = arith.constant 0 : index
    %c0_40 = arith.constant 0 : index
    %85 = vector.load %arg13[%c0_39, %c0_40] : memref<16x128xbf16, #tpu.memory_space<vmem>>, vector<16x128xbf16>
    tpu.vector_store %arg13[%c0_39, %c0_40], %83 {strides = array<i32>} : memref<16x128xbf16, #tpu.memory_space<vmem>>, vector<16x128xbf16>,
    %86 = arith.index_cast %50 : i32 to index
    %c0_41 = arith.constant 0 : index
    %87 = vector.load %arg7[%86, %c0_41] : memref<128x128xbf16, #tpu.memory_space<vmem>>, vector<16x128xbf16>
    tpu.vector_store %arg7[%86, %c0_41], %83 {strides = array<i32>} : memref<128x128xbf16, #tpu.memory_space<vmem>>, vector<16x128xbf16>,
    %c2_i32 = arith.constant 2 : i32
    %c16_i32_42 = arith.constant 16 : i32
    %88 = arith.muli %c2_i32, %c16_i32_42 : i32
    %89 = tpu.assume_multiple %88, 16 : i32
    %90 = arith.index_cast %89 : i32 to index
    %c0_43 = arith.constant 0 : index
    %91 = vector.load %arg12[%90, %c0_43] : memref<128x512xf32, #tpu.memory_space<vmem>>, vector<16x512xf32>
    %c0_44 = arith.constant 0 : index
    %c0_45 = arith.constant 0 : index
    %92 = vector.load %arg13[%c0_44, %c0_45] : memref<16x128xbf16, #tpu.memory_space<vmem>>, vector<16x128xbf16>
    %c0_46 = arith.constant 0 : index
    %c0_47 = arith.constant 0 : index
    %93 = vector.load %arg11[%c0_46, %c0_47] : memref<128x512xbf16, #tpu.memory_space<vmem>>, vector<128x512xbf16>
    %cst_48 = arith.constant dense<0.000000e+00> : vector<16x512xf32>
    %94 = tpu.matmul %92, %93, %cst_48 {dimension_numbers = #tpu.dot_dimension_numbers<[1], [0], [0], [1], [0, 0, 1, 1], [], []>} : vector<16x128xbf16>, vector<128x512xbf16>, vector<16x512xf32> -> vector<16x512xf32>
    %95 = arith.addf %91, %94 : vector<16x512xf32>
    %96 = vector.extract_strided_slice %95 {offsets = [0, 0], sizes = [16, 128], strides = [1, 1]} : vector<16x512xf32> to vector<16x128xf32>
    %97 = arith.negf %96 : vector<16x128xf32>
    %98 = math.exp %97 : vector<16x128xf32>
    %cst_49 = arith.constant 1.000000e+00 : f32
    %99 = vector.broadcast %cst_49 : f32 to vector<16x128xf32>
    %100 = arith.addf %99, %98 : vector<16x128xf32>
    %101 = arith.divf %99, %100 : vector<16x128xf32>
    %102 = vector.extract_strided_slice %95 {offsets = [0, 128], sizes = [16, 128], strides = [1, 1]} : vector<16x512xf32> to vector<16x128xf32>
    %103 = arith.negf %102 : vector<16x128xf32>
    %104 = math.exp %103 : vector<16x128xf32>
    %cst_50 = arith.constant 1.000000e+00 : f32
    %105 = vector.broadcast %cst_50 : f32 to vector<16x128xf32>
    %106 = arith.addf %105, %104 : vector<16x128xf32>
    %107 = arith.divf %105, %106 : vector<16x128xf32>
    %108 = vector.extract_strided_slice %95 {offsets = [0, 256], sizes = [16, 128], strides = [1, 1]} : vector<16x512xf32> to vector<16x128xf32>
    %109 = math.tanh %108 : vector<16x128xf32>
    %110 = vector.extract_strided_slice %95 {offsets = [0, 384], sizes = [16, 128], strides = [1, 1]} : vector<16x512xf32> to vector<16x128xf32>
    %111 = arith.negf %110 : vector<16x128xf32>
    %112 = math.exp %111 : vector<16x128xf32>
    %cst_51 = arith.constant 1.000000e+00 : f32
    %113 = vector.broadcast %cst_51 : f32 to vector<16x128xf32>
    %114 = arith.addf %113, %112 : vector<16x128xf32>
    %115 = arith.divf %113, %114 : vector<16x128xf32>
    %c0_52 = arith.constant 0 : index
    %c0_53 = arith.constant 0 : index
    %116 = vector.load %arg14[%c0_52, %c0_53] : memref<16x128xf32, #tpu.memory_space<vmem>>, vector<16x128xf32>
    %117 = arith.mulf %107, %116 : vector<16x128xf32>
    %118 = arith.mulf %101, %109 : vector<16x128xf32>
    %119 = arith.addf %117, %118 : vector<16x128xf32>
    %120 = math.tanh %119 : vector<16x128xf32>
    %121 = arith.mulf %115, %120 : vector<16x128xf32>
    %122 = arith.truncf %121 : vector<16x128xf32> to vector<16x128xbf16>
    %c0_54 = arith.constant 0 : index
    %c0_55 = arith.constant 0 : index
    %123 = vector.load %arg14[%c0_54, %c0_55] : memref<16x128xf32, #tpu.memory_space<vmem>>, vector<16x128xf32>
    tpu.vector_store %arg14[%c0_54, %c0_55], %119 {strides = array<i32>} : memref<16x128xf32, #tpu.memory_space<vmem>>, vector<16x128xf32>,
    %c0_56 = arith.constant 0 : index
    %c0_57 = arith.constant 0 : index
    %124 = vector.load %arg13[%c0_56, %c0_57] : memref<16x128xbf16, #tpu.memory_space<vmem>>, vector<16x128xbf16>
    tpu.vector_store %arg13[%c0_56, %c0_57], %122 {strides = array<i32>} : memref<16x128xbf16, #tpu.memory_space<vmem>>, vector<16x128xbf16>,
    %125 = arith.index_cast %89 : i32 to index
    %c0_58 = arith.constant 0 : index
    %126 = vector.load %arg7[%125, %c0_58] : memref<128x128xbf16, #tpu.memory_space<vmem>>, vector<16x128xbf16>
    tpu.vector_store %arg7[%125, %c0_58], %122 {strides = array<i32>} : memref<128x128xbf16, #tpu.memory_space<vmem>>, vector<16x128xbf16>,
    %c3_i32 = arith.constant 3 : i32
    %c16_i32_59 = arith.constant 16 : i32
    %127 = arith.muli %c3_i32, %c16_i32_59 : i32
    %128 = tpu.assume_multiple %127, 16 : i32
    %129 = arith.index_cast %128 : i32 to index
    %c0_60 = arith.constant 0 : index
    %130 = vector.load %arg12[%129, %c0_60] : memref<128x512xf32, #tpu.memory_space<vmem>>, vector<16x512xf32>
    %c0_61 = arith.constant 0 : index
    %c0_62 = arith.constant 0 : index
    %131 = vector.load %arg13[%c0_61, %c0_62] : memref<16x128xbf16, #tpu.memory_space<vmem>>, vector<16x128xbf16>
    %c0_63 = arith.constant 0 : index
    %c0_64 = arith.constant 0 : index
    %132 = vector.load %arg11[%c0_63, %c0_64] : memref<128x512xbf16, #tpu.memory_space<vmem>>, vector<128x512xbf16>
    %cst_65 = arith.constant dense<0.000000e+00> : vector<16x512xf32>
    %133 = tpu.matmul %131, %132, %cst_65 {dimension_numbers = #tpu.dot_dimension_numbers<[1], [0], [0], [1], [0, 0, 1, 1], [], []>} : vector<16x128xbf16>, vector<128x512xbf16>, vector<16x512xf32> -> vector<16x512xf32>
    %134 = arith.addf %130, %133 : vector<16x512xf32>
    %135 = vector.extract_strided_slice %134 {offsets = [0, 0], sizes = [16, 128], strides = [1, 1]} : vector<16x512xf32> to vector<16x128xf32>
    %136 = arith.negf %135 : vector<16x128xf32>
    %137 = math.exp %136 : vector<16x128xf32>
    %cst_66 = arith.constant 1.000000e+00 : f32
    %138 = vector.broadcast %cst_66 : f32 to vector<16x128xf32>
    %139 = arith.addf %138, %137 : vector<16x128xf32>
    %140 = arith.divf %138, %139 : vector<16x128xf32>
    %141 = vector.extract_strided_slice %134 {offsets = [0, 128], sizes = [16, 128], strides = [1, 1]} : vector<16x512xf32> to vector<16x128xf32>
    %142 = arith.negf %141 : vector<16x128xf32>
    %143 = math.exp %142 : vector<16x128xf32>
    %cst_67 = arith.constant 1.000000e+00 : f32
    %144 = vector.broadcast %cst_67 : f32 to vector<16x128xf32>
    %145 = arith.addf %144, %143 : vector<16x128xf32>
    %146 = arith.divf %144, %145 : vector<16x128xf32>
    %147 = vector.extract_strided_slice %134 {offsets = [0, 256], sizes = [16, 128], strides = [1, 1]} : vector<16x512xf32> to vector<16x128xf32>
    %148 = math.tanh %147 : vector<16x128xf32>
    %149 = vector.extract_strided_slice %134 {offsets = [0, 384], sizes = [16, 128], strides = [1, 1]} : vector<16x512xf32> to vector<16x128xf32>
    %150 = arith.negf %149 : vector<16x128xf32>
    %151 = math.exp %150 : vector<16x128xf32>
    %cst_68 = arith.constant 1.000000e+00 : f32
    %152 = vector.broadcast %cst_68 : f32 to vector<16x128xf32>
    %153 = arith.addf %152, %151 : vector<16x128xf32>
    %154 = arith.divf %152, %153 : vector<16x128xf32>
    %c0_69 = arith.constant 0 : index
    %c0_70 = arith.constant 0 : index
    %155 = vector.load %arg14[%c0_69, %c0_70] : memref<16x128xf32, #tpu.memory_space<vmem>>, vector<16x128xf32>
    %156 = arith.mulf %146, %155 : vector<16x128xf32>
    %157 = arith.mulf %140, %148 : vector<16x128xf32>
    %158 = arith.addf %156, %157 : vector<16x128xf32>
    %159 = math.tanh %158 : vector<16x128xf32>
    %160 = arith.mulf %154, %159 : vector<16x128xf32>
    %161 = arith.truncf %160 : vector<16x128xf32> to vector<16x128xbf16>
    %c0_71 = arith.constant 0 : index
    %c0_72 = arith.constant 0 : index
    %162 = vector.load %arg14[%c0_71, %c0_72] : memref<16x128xf32, #tpu.memory_space<vmem>>, vector<16x128xf32>
    tpu.vector_store %arg14[%c0_71, %c0_72], %158 {strides = array<i32>} : memref<16x128xf32, #tpu.memory_space<vmem>>, vector<16x128xf32>,
    %c0_73 = arith.constant 0 : index
    %c0_74 = arith.constant 0 : index
    %163 = vector.load %arg13[%c0_73, %c0_74] : memref<16x128xbf16, #tpu.memory_space<vmem>>, vector<16x128xbf16>
    tpu.vector_store %arg13[%c0_73, %c0_74], %161 {strides = array<i32>} : memref<16x128xbf16, #tpu.memory_space<vmem>>, vector<16x128xbf16>,
    %164 = arith.index_cast %128 : i32 to index
    %c0_75 = arith.constant 0 : index
    %165 = vector.load %arg7[%164, %c0_75] : memref<128x128xbf16, #tpu.memory_space<vmem>>, vector<16x128xbf16>
    tpu.vector_store %arg7[%164, %c0_75], %161 {strides = array<i32>} : memref<128x128xbf16, #tpu.memory_space<vmem>>, vector<16x128xbf16>,
    %c4_i32 = arith.constant 4 : i32
    %c16_i32_76 = arith.constant 16 : i32
    %166 = arith.muli %c4_i32, %c16_i32_76 : i32
    %167 = tpu.assume_multiple %166, 16 : i32
    %168 = arith.index_cast %167 : i32 to index
    %c0_77 = arith.constant 0 : index
    %169 = vector.load %arg12[%168, %c0_77] : memref<128x512xf32, #tpu.memory_space<vmem>>, vector<16x512xf32>
    %c0_78 = arith.constant 0 : index
    %c0_79 = arith.constant 0 : index
    %170 = vector.load %arg13[%c0_78, %c0_79] : memref<16x128xbf16, #tpu.memory_space<vmem>>, vector<16x128xbf16>
    %c0_80 = arith.constant 0 : index
    %c0_81 = arith.constant 0 : index
    %171 = vector.load %arg11[%c0_80, %c0_81] : memref<128x512xbf16, #tpu.memory_space<vmem>>, vector<128x512xbf16>
    %cst_82 = arith.constant dense<0.000000e+00> : vector<16x512xf32>
    %172 = tpu.matmul %170, %171, %cst_82 {dimension_numbers = #tpu.dot_dimension_numbers<[1], [0], [0], [1], [0, 0, 1, 1], [], []>} : vector<16x128xbf16>, vector<128x512xbf16>, vector<16x512xf32> -> vector<16x512xf32>
    %173 = arith.addf %169, %172 : vector<16x512xf32>
    %174 = vector.extract_strided_slice %173 {offsets = [0, 0], sizes = [16, 128], strides = [1, 1]} : vector<16x512xf32> to vector<16x128xf32>
    %175 = arith.negf %174 : vector<16x128xf32>
    %176 = math.exp %175 : vector<16x128xf32>
    %cst_83 = arith.constant 1.000000e+00 : f32
    %177 = vector.broadcast %cst_83 : f32 to vector<16x128xf32>
    %178 = arith.addf %177, %176 : vector<16x128xf32>
    %179 = arith.divf %177, %178 : vector<16x128xf32>
    %180 = vector.extract_strided_slice %173 {offsets = [0, 128], sizes = [16, 128], strides = [1, 1]} : vector<16x512xf32> to vector<16x128xf32>
    %181 = arith.negf %180 : vector<16x128xf32>
    %182 = math.exp %181 : vector<16x128xf32>
    %cst_84 = arith.constant 1.000000e+00 : f32
    %183 = vector.broadcast %cst_84 : f32 to vector<16x128xf32>
    %184 = arith.addf %183, %182 : vector<16x128xf32>
    %185 = arith.divf %183, %184 : vector<16x128xf32>
    %186 = vector.extract_strided_slice %173 {offsets = [0, 256], sizes = [16, 128], strides = [1, 1]} : vector<16x512xf32> to vector<16x128xf32>
    %187 = math.tanh %186 : vector<16x128xf32>
    %188 = vector.extract_strided_slice %173 {offsets = [0, 384], sizes = [16, 128], strides = [1, 1]} : vector<16x512xf32> to vector<16x128xf32>
    %189 = arith.negf %188 : vector<16x128xf32>
    %190 = math.exp %189 : vector<16x128xf32>
    %cst_85 = arith.constant 1.000000e+00 : f32
    %191 = vector.broadcast %cst_85 : f32 to vector<16x128xf32>
    %192 = arith.addf %191, %190 : vector<16x128xf32>
    %193 = arith.divf %191, %192 : vector<16x128xf32>
    %c0_86 = arith.constant 0 : index
    %c0_87 = arith.constant 0 : index
    %194 = vector.load %arg14[%c0_86, %c0_87] : memref<16x128xf32, #tpu.memory_space<vmem>>, vector<16x128xf32>
    %195 = arith.mulf %185, %194 : vector<16x128xf32>
    %196 = arith.mulf %179, %187 : vector<16x128xf32>
    %197 = arith.addf %195, %196 : vector<16x128xf32>
    %198 = math.tanh %197 : vector<16x128xf32>
    %199 = arith.mulf %193, %198 : vector<16x128xf32>
    %200 = arith.truncf %199 : vector<16x128xf32> to vector<16x128xbf16>
    %c0_88 = arith.constant 0 : index
    %c0_89 = arith.constant 0 : index
    %201 = vector.load %arg14[%c0_88, %c0_89] : memref<16x128xf32, #tpu.memory_space<vmem>>, vector<16x128xf32>
    tpu.vector_store %arg14[%c0_88, %c0_89], %197 {strides = array<i32>} : memref<16x128xf32, #tpu.memory_space<vmem>>, vector<16x128xf32>,
    %c0_90 = arith.constant 0 : index
    %c0_91 = arith.constant 0 : index
    %202 = vector.load %arg13[%c0_90, %c0_91] : memref<16x128xbf16, #tpu.memory_space<vmem>>, vector<16x128xbf16>
    tpu.vector_store %arg13[%c0_90, %c0_91], %200 {strides = array<i32>} : memref<16x128xbf16, #tpu.memory_space<vmem>>, vector<16x128xbf16>,
    %203 = arith.index_cast %167 : i32 to index
    %c0_92 = arith.constant 0 : index
    %204 = vector.load %arg7[%203, %c0_92] : memref<128x128xbf16, #tpu.memory_space<vmem>>, vector<16x128xbf16>
    tpu.vector_store %arg7[%203, %c0_92], %200 {strides = array<i32>} : memref<128x128xbf16, #tpu.memory_space<vmem>>, vector<16x128xbf16>,
    %c5_i32 = arith.constant 5 : i32
    %c16_i32_93 = arith.constant 16 : i32
    %205 = arith.muli %c5_i32, %c16_i32_93 : i32
    %206 = tpu.assume_multiple %205, 16 : i32
    %207 = arith.index_cast %206 : i32 to index
    %c0_94 = arith.constant 0 : index
    %208 = vector.load %arg12[%207, %c0_94] : memref<128x512xf32, #tpu.memory_space<vmem>>, vector<16x512xf32>
    %c0_95 = arith.constant 0 : index
    %c0_96 = arith.constant 0 : index
    %209 = vector.load %arg13[%c0_95, %c0_96] : memref<16x128xbf16, #tpu.memory_space<vmem>>, vector<16x128xbf16>
    %c0_97 = arith.constant 0 : index
    %c0_98 = arith.constant 0 : index
    %210 = vector.load %arg11[%c0_97, %c0_98] : memref<128x512xbf16, #tpu.memory_space<vmem>>, vector<128x512xbf16>
    %cst_99 = arith.constant dense<0.000000e+00> : vector<16x512xf32>
    %211 = tpu.matmul %209, %210, %cst_99 {dimension_numbers = #tpu.dot_dimension_numbers<[1], [0], [0], [1], [0, 0, 1, 1], [], []>} : vector<16x128xbf16>, vector<128x512xbf16>, vector<16x512xf32> -> vector<16x512xf32>
    %212 = arith.addf %208, %211 : vector<16x512xf32>
    %213 = vector.extract_strided_slice %212 {offsets = [0, 0], sizes = [16, 128], strides = [1, 1]} : vector<16x512xf32> to vector<16x128xf32>
    %214 = arith.negf %213 : vector<16x128xf32>
    %215 = math.exp %214 : vector<16x128xf32>
    %cst_100 = arith.constant 1.000000e+00 : f32
    %216 = vector.broadcast %cst_100 : f32 to vector<16x128xf32>
    %217 = arith.addf %216, %215 : vector<16x128xf32>
    %218 = arith.divf %216, %217 : vector<16x128xf32>
    %219 = vector.extract_strided_slice %212 {offsets = [0, 128], sizes = [16, 128], strides = [1, 1]} : vector<16x512xf32> to vector<16x128xf32>
    %220 = arith.negf %219 : vector<16x128xf32>
    %221 = math.exp %220 : vector<16x128xf32>
    %cst_101 = arith.constant 1.000000e+00 : f32
    %222 = vector.broadcast %cst_101 : f32 to vector<16x128xf32>
    %223 = arith.addf %222, %221 : vector<16x128xf32>
    %224 = arith.divf %222, %223 : vector<16x128xf32>
    %225 = vector.extract_strided_slice %212 {offsets = [0, 256], sizes = [16, 128], strides = [1, 1]} : vector<16x512xf32> to vector<16x128xf32>
    %226 = math.tanh %225 : vector<16x128xf32>
    %227 = vector.extract_strided_slice %212 {offsets = [0, 384], sizes = [16, 128], strides = [1, 1]} : vector<16x512xf32> to vector<16x128xf32>
    %228 = arith.negf %227 : vector<16x128xf32>
    %229 = math.exp %228 : vector<16x128xf32>
    %cst_102 = arith.constant 1.000000e+00 : f32
    %230 = vector.broadcast %cst_102 : f32 to vector<16x128xf32>
    %231 = arith.addf %230, %229 : vector<16x128xf32>
    %232 = arith.divf %230, %231 : vector<16x128xf32>
    %c0_103 = arith.constant 0 : index
    %c0_104 = arith.constant 0 : index
    %233 = vector.load %arg14[%c0_103, %c0_104] : memref<16x128xf32, #tpu.memory_space<vmem>>, vector<16x128xf32>
    %234 = arith.mulf %224, %233 : vector<16x128xf32>
    %235 = arith.mulf %218, %226 : vector<16x128xf32>
    %236 = arith.addf %234, %235 : vector<16x128xf32>
    %237 = math.tanh %236 : vector<16x128xf32>
    %238 = arith.mulf %232, %237 : vector<16x128xf32>
    %239 = arith.truncf %238 : vector<16x128xf32> to vector<16x128xbf16>
    %c0_105 = arith.constant 0 : index
    %c0_106 = arith.constant 0 : index
    %240 = vector.load %arg14[%c0_105, %c0_106] : memref<16x128xf32, #tpu.memory_space<vmem>>, vector<16x128xf32>
    tpu.vector_store %arg14[%c0_105, %c0_106], %236 {strides = array<i32>} : memref<16x128xf32, #tpu.memory_space<vmem>>, vector<16x128xf32>,
    %c0_107 = arith.constant 0 : index
    %c0_108 = arith.constant 0 : index
    %241 = vector.load %arg13[%c0_107, %c0_108] : memref<16x128xbf16, #tpu.memory_space<vmem>>, vector<16x128xbf16>
    tpu.vector_store %arg13[%c0_107, %c0_108], %239 {strides = array<i32>} : memref<16x128xbf16, #tpu.memory_space<vmem>>, vector<16x128xbf16>,
    %242 = arith.index_cast %206 : i32 to index
    %c0_109 = arith.constant 0 : index
    %243 = vector.load %arg7[%242, %c0_109] : memref<128x128xbf16, #tpu.memory_space<vmem>>, vector<16x128xbf16>
    tpu.vector_store %arg7[%242, %c0_109], %239 {strides = array<i32>} : memref<128x128xbf16, #tpu.memory_space<vmem>>, vector<16x128xbf16>,
    %c6_i32 = arith.constant 6 : i32
    %c16_i32_110 = arith.constant 16 : i32
    %244 = arith.muli %c6_i32, %c16_i32_110 : i32
    %245 = tpu.assume_multiple %244, 16 : i32
    %246 = arith.index_cast %245 : i32 to index
    %c0_111 = arith.constant 0 : index
    %247 = vector.load %arg12[%246, %c0_111] : memref<128x512xf32, #tpu.memory_space<vmem>>, vector<16x512xf32>
    %c0_112 = arith.constant 0 : index
    %c0_113 = arith.constant 0 : index
    %248 = vector.load %arg13[%c0_112, %c0_113] : memref<16x128xbf16, #tpu.memory_space<vmem>>, vector<16x128xbf16>
    %c0_114 = arith.constant 0 : index
    %c0_115 = arith.constant 0 : index
    %249 = vector.load %arg11[%c0_114, %c0_115] : memref<128x512xbf16, #tpu.memory_space<vmem>>, vector<128x512xbf16>
    %cst_116 = arith.constant dense<0.000000e+00> : vector<16x512xf32>
    %250 = tpu.matmul %248, %249, %cst_116 {dimension_numbers = #tpu.dot_dimension_numbers<[1], [0], [0], [1], [0, 0, 1, 1], [], []>} : vector<16x128xbf16>, vector<128x512xbf16>, vector<16x512xf32> -> vector<16x512xf32>
    %251 = arith.addf %247, %250 : vector<16x512xf32>
    %252 = vector.extract_strided_slice %251 {offsets = [0, 0], sizes = [16, 128], strides = [1, 1]} : vector<16x512xf32> to vector<16x128xf32>
    %253 = arith.negf %252 : vector<16x128xf32>
    %254 = math.exp %253 : vector<16x128xf32>
    %cst_117 = arith.constant 1.000000e+00 : f32
    %255 = vector.broadcast %cst_117 : f32 to vector<16x128xf32>
    %256 = arith.addf %255, %254 : vector<16x128xf32>
    %257 = arith.divf %255, %256 : vector<16x128xf32>
    %258 = vector.extract_strided_slice %251 {offsets = [0, 128], sizes = [16, 128], strides = [1, 1]} : vector<16x512xf32> to vector<16x128xf32>
    %259 = arith.negf %258 : vector<16x128xf32>
    %260 = math.exp %259 : vector<16x128xf32>
    %cst_118 = arith.constant 1.000000e+00 : f32
    %261 = vector.broadcast %cst_118 : f32 to vector<16x128xf32>
    %262 = arith.addf %261, %260 : vector<16x128xf32>
    %263 = arith.divf %261, %262 : vector<16x128xf32>
    %264 = vector.extract_strided_slice %251 {offsets = [0, 256], sizes = [16, 128], strides = [1, 1]} : vector<16x512xf32> to vector<16x128xf32>
    %265 = math.tanh %264 : vector<16x128xf32>
    %266 = vector.extract_strided_slice %251 {offsets = [0, 384], sizes = [16, 128], strides = [1, 1]} : vector<16x512xf32> to vector<16x128xf32>
    %267 = arith.negf %266 : vector<16x128xf32>
    %268 = math.exp %267 : vector<16x128xf32>
    %cst_119 = arith.constant 1.000000e+00 : f32
    %269 = vector.broadcast %cst_119 : f32 to vector<16x128xf32>
    %270 = arith.addf %269, %268 : vector<16x128xf32>
    %271 = arith.divf %269, %270 : vector<16x128xf32>
    %c0_120 = arith.constant 0 : index
    %c0_121 = arith.constant 0 : index
    %272 = vector.load %arg14[%c0_120, %c0_121] : memref<16x128xf32, #tpu.memory_space<vmem>>, vector<16x128xf32>
    %273 = arith.mulf %263, %272 : vector<16x128xf32>
    %274 = arith.mulf %257, %265 : vector<16x128xf32>
    %275 = arith.addf %273, %274 : vector<16x128xf32>
    %276 = math.tanh %275 : vector<16x128xf32>
    %277 = arith.mulf %271, %276 : vector<16x128xf32>
    %278 = arith.truncf %277 : vector<16x128xf32> to vector<16x128xbf16>
    %c0_122 = arith.constant 0 : index
    %c0_123 = arith.constant 0 : index
    %279 = vector.load %arg14[%c0_122, %c0_123] : memref<16x128xf32, #tpu.memory_space<vmem>>, vector<16x128xf32>
    tpu.vector_store %arg14[%c0_122, %c0_123], %275 {strides = array<i32>} : memref<16x128xf32, #tpu.memory_space<vmem>>, vector<16x128xf32>,
    %c0_124 = arith.constant 0 : index
    %c0_125 = arith.constant 0 : index
    %280 = vector.load %arg13[%c0_124, %c0_125] : memref<16x128xbf16, #tpu.memory_space<vmem>>, vector<16x128xbf16>
    tpu.vector_store %arg13[%c0_124, %c0_125], %278 {strides = array<i32>} : memref<16x128xbf16, #tpu.memory_space<vmem>>, vector<16x128xbf16>,
    %281 = arith.index_cast %245 : i32 to index
    %c0_126 = arith.constant 0 : index
    %282 = vector.load %arg7[%281, %c0_126] : memref<128x128xbf16, #tpu.memory_space<vmem>>, vector<16x128xbf16>
    tpu.vector_store %arg7[%281, %c0_126], %278 {strides = array<i32>} : memref<128x128xbf16, #tpu.memory_space<vmem>>, vector<16x128xbf16>,
    %c7_i32 = arith.constant 7 : i32
    %c16_i32_127 = arith.constant 16 : i32
    %283 = arith.muli %c7_i32, %c16_i32_127 : i32
    %284 = tpu.assume_multiple %283, 16 : i32
    %285 = arith.index_cast %284 : i32 to index
    %c0_128 = arith.constant 0 : index
    %286 = vector.load %arg12[%285, %c0_128] : memref<128x512xf32, #tpu.memory_space<vmem>>, vector<16x512xf32>
    %c0_129 = arith.constant 0 : index
    %c0_130 = arith.constant 0 : index
    %287 = vector.load %arg13[%c0_129, %c0_130] : memref<16x128xbf16, #tpu.memory_space<vmem>>, vector<16x128xbf16>
    %c0_131 = arith.constant 0 : index
    %c0_132 = arith.constant 0 : index
    %288 = vector.load %arg11[%c0_131, %c0_132] : memref<128x512xbf16, #tpu.memory_space<vmem>>, vector<128x512xbf16>
    %cst_133 = arith.constant dense<0.000000e+00> : vector<16x512xf32>
    %289 = tpu.matmul %287, %288, %cst_133 {dimension_numbers = #tpu.dot_dimension_numbers<[1], [0], [0], [1], [0, 0, 1, 1], [], []>} : vector<16x128xbf16>, vector<128x512xbf16>, vector<16x512xf32> -> vector<16x512xf32>
    %290 = arith.addf %286, %289 : vector<16x512xf32>
    %291 = vector.extract_strided_slice %290 {offsets = [0, 0], sizes = [16, 128], strides = [1, 1]} : vector<16x512xf32> to vector<16x128xf32>
    %292 = arith.negf %291 : vector<16x128xf32>
    %293 = math.exp %292 : vector<16x128xf32>
    %cst_134 = arith.constant 1.000000e+00 : f32
    %294 = vector.broadcast %cst_134 : f32 to vector<16x128xf32>
    %295 = arith.addf %294, %293 : vector<16x128xf32>
    %296 = arith.divf %294, %295 : vector<16x128xf32>
    %297 = vector.extract_strided_slice %290 {offsets = [0, 128], sizes = [16, 128], strides = [1, 1]} : vector<16x512xf32> to vector<16x128xf32>
    %298 = arith.negf %297 : vector<16x128xf32>
    %299 = math.exp %298 : vector<16x128xf32>
    %cst_135 = arith.constant 1.000000e+00 : f32
    %300 = vector.broadcast %cst_135 : f32 to vector<16x128xf32>
    %301 = arith.addf %300, %299 : vector<16x128xf32>
    %302 = arith.divf %300, %301 : vector<16x128xf32>
    %303 = vector.extract_strided_slice %290 {offsets = [0, 256], sizes = [16, 128], strides = [1, 1]} : vector<16x512xf32> to vector<16x128xf32>
    %304 = math.tanh %303 : vector<16x128xf32>
    %305 = vector.extract_strided_slice %290 {offsets = [0, 384], sizes = [16, 128], strides = [1, 1]} : vector<16x512xf32> to vector<16x128xf32>
    %306 = arith.negf %305 : vector<16x128xf32>
    %307 = math.exp %306 : vector<16x128xf32>
    %cst_136 = arith.constant 1.000000e+00 : f32
    %308 = vector.broadcast %cst_136 : f32 to vector<16x128xf32>
    %309 = arith.addf %308, %307 : vector<16x128xf32>
    %310 = arith.divf %308, %309 : vector<16x128xf32>
    %c0_137 = arith.constant 0 : index
    %c0_138 = arith.constant 0 : index
    %311 = vector.load %arg14[%c0_137, %c0_138] : memref<16x128xf32, #tpu.memory_space<vmem>>, vector<16x128xf32>
    %312 = arith.mulf %302, %311 : vector<16x128xf32>
    %313 = arith.mulf %296, %304 : vector<16x128xf32>
    %314 = arith.addf %312, %313 : vector<16x128xf32>
    %315 = math.tanh %314 : vector<16x128xf32>
    %316 = arith.mulf %310, %315 : vector<16x128xf32>
    %317 = arith.truncf %316 : vector<16x128xf32> to vector<16x128xbf16>
    %c0_139 = arith.constant 0 : index
    %c0_140 = arith.constant 0 : index
    %318 = vector.load %arg14[%c0_139, %c0_140] : memref<16x128xf32, #tpu.memory_space<vmem>>, vector<16x128xf32>
    tpu.vector_store %arg14[%c0_139, %c0_140], %314 {strides = array<i32>} : memref<16x128xf32, #tpu.memory_space<vmem>>, vector<16x128xf32>,
    %c0_141 = arith.constant 0 : index
    %c0_142 = arith.constant 0 : index
    %319 = vector.load %arg13[%c0_141, %c0_142] : memref<16x128xbf16, #tpu.memory_space<vmem>>, vector<16x128xbf16>
    tpu.vector_store %arg13[%c0_141, %c0_142], %317 {strides = array<i32>} : memref<16x128xbf16, #tpu.memory_space<vmem>>, vector<16x128xbf16>,
    %320 = arith.index_cast %284 : i32 to index
    %c0_143 = arith.constant 0 : index
    %321 = vector.load %arg7[%320, %c0_143] : memref<128x128xbf16, #tpu.memory_space<vmem>>, vector<16x128xbf16>
    tpu.vector_store %arg7[%320, %c0_143], %317 {strides = array<i32>} : memref<128x128xbf16, #tpu.memory_space<vmem>>, vector<16x128xbf16>,
    %c8_i32 = arith.constant 8 : i32
    %c0_i32_144 = arith.constant 0 : i32
    %322 = arith.cmpi eq, %arg0, %c0_i32_144 : i32
    %323 = arith.extui %322 : i1 to i32
    %c0_i32_145 = arith.constant 0 : i32
    %324 = arith.cmpi ne, %323, %c0_i32_145 : i32
    scf.if %324 {
      %c0_146 = arith.constant 0 : index
      %c0_147 = arith.constant 0 : index
      %325 = vector.load %arg13[%c0_146, %c0_147] : memref<16x128xbf16, #tpu.memory_space<vmem>>, vector<16x128xbf16>
      %326 = arith.extf %325 : vector<16x128xbf16> to vector<16x128xf32>
      %c0_148 = arith.constant 0 : index
      %c0_149 = arith.constant 0 : index
      %327 = vector.load %arg8[%c0_148, %c0_149] : memref<16x128xf32, #tpu.memory_space<vmem>>, vector<16x128xf32>
      tpu.vector_store %arg8[%c0_148, %c0_149], %326 {strides = array<i32>} : memref<16x128xf32, #tpu.memory_space<vmem>>, vector<16x128xf32>,
      %c0_150 = arith.constant 0 : index
      %c0_151 = arith.constant 0 : index
      %328 = vector.load %arg14[%c0_150, %c0_151] : memref<16x128xf32, #tpu.memory_space<vmem>>, vector<16x128xf32>
      %c0_152 = arith.constant 0 : index
      %c0_153 = arith.constant 0 : index
      %329 = vector.load %arg9[%c0_152, %c0_153] : memref<16x128xf32, #tpu.memory_space<vmem>>, vector<16x128xf32>
      tpu.vector_store %arg9[%c0_152, %c0_153], %328 {strides = array<i32>} : memref<16x128xf32, #tpu.memory_space<vmem>>, vector<16x128xf32>,
    } else {
    }
    return
  }
  func.func @transform_0(%arg0: i32) -> (i32, i32) {
    %c0_i32 = arith.constant 0 : i32
    %c0_i32_0 = arith.constant 0 : i32
    return %arg0, %c0_i32 : i32, i32
  }
  func.func @transform_2(%arg0: i32) -> (i32, i32) {
    %c0_i32 = arith.constant 0 : i32
    %c0_i32_0 = arith.constant 0 : i32
    %c0_i32_1 = arith.constant 0 : i32
    return %c0_i32, %c0_i32_0 : i32, i32
  }
  func.func @transform_4(%arg0: i32) -> (i32, i32) {
    %c0_i32 = arith.constant 0 : i32
    %c0_i32_0 = arith.constant 0 : i32
    %c0_i32_1 = arith.constant 0 : i32
    return %c0_i32, %c0_i32_0 : i32, i32
  }
  func.func @transform_5(%arg0: i32) -> (i32, i32) {
    %c0_i32 = arith.constant 0 : i32
    %c0_i32_0 = arith.constant 0 : i32
    %c0_i32_1 = arith.constant 0 : i32
    return %c0_i32, %c0_i32_0 : i32, i32
  }
  func.func @transform_6(%arg0: i32) -> (i32, i32) {
    %c0_i32 = arith.constant 0 : i32
    %c0_i32_0 = arith.constant 0 : i32
    return %arg0, %c0_i32 : i32, i32
  }
  func.func @transform_7(%arg0: i32) -> (i32, i32) {
    %c0_i32 = arith.constant 0 : i32
    %c0_i32_0 = arith.constant 0 : i32
    %c0_i32_1 = arith.constant 0 : i32
    return %c0_i32, %c0_i32_0 : i32, i32
  }
  func.func @transform_8(%arg0: i32) -> (i32, i32) {
    %c0_i32 = arith.constant 0 : i32
    %c0_i32_0 = arith.constant 0 : i32
    %c0_i32_1 = arith.constant 0 : i32
    return %c0_i32, %c0_i32_0 : i32, i32
  }
}

</mosaic_0001>

<bundles_post_ra>
// kernel: rnn_model_forward.2
= control target key start
LH: loop header
LB: loop body
LE: loop exit
PB: predicated region body
PF: predicated region fallthrough
CT: control target
= control target key end

     0   :  { %s4286_s0 = inlined_call_operand.vmem [shape: bf16[128,128], index: 0, kind: input, shape index: {}]   ;;  %s4287_s1 = inlined_call_operand.vmem [shape: bf16[128,512], index: 1, kind: input, shape index: {}]   ;;  %s4288_s2 = inlined_call_operand.vmem [shape: f32[1,512], index: 2, kind: input, shape index: {}]   ;;  %s4289_s3 = inlined_call_operand.vmem [shape: bf16[128,512], index: 3, kind: input, shape index: {}]   ;;  %s4290_s4 = inlined_call_operand.vmem [shape: f32[16,128], index: 4, kind: input, shape index: {}]   ;;  %s4291_s5 = inlined_call_operand.vmem [shape: f32[16,128], index: 5, kind: input, shape index: {}]   ;;  %s4292_s6 = inlined_call_operand.vmem [shape: bf16[128,128], index: 6, kind: output, shape index: {0}]   ;;  %s4293_s7 = inlined_call_operand.vmem [shape: f32[16,128], index: 7, kind: output, shape index: {1}]   ;;  %s4294_s8 = inlined_call_operand.vmem [shape: f32[16,128], index: 8, kind: output, shape index: {2}]  }
   0x1   :  { %v44_v0 = vld [vmem:[%s4287_s1] sm:$0xf]  ;;  %v46_v1 = vld [vmem:[%s4287_s1 + $0x10] sm:$0xf]  ;;  %v48_v2 = vld [vmem:[%s4287_s1 + $0x4] sm:$0xf] }
   0x2   :  { %45 = vst [vmem:[#allocation2] sm:$0xf] %v44_v0  ;;  %47 = vst [vmem:[#allocation2 + $0x4] sm:$0xf] %v46_v1  ;;  %v50_v3 = vld [vmem:[%s4287_s1 + $0x14] sm:$0xf] }
   0x3   :  { %49 = vst [vmem:[#allocation2 + $0x8] sm:$0xf] %v48_v2  ;;  %v52_v4 = vld [vmem:[%s4287_s1 + $0x8] sm:$0xf]  ;;  %v54_v5 = vld [vmem:[%s4287_s1 + $0x18] sm:$0xf] }
   0x4   :  { %51 = vst [vmem:[#allocation2 + $0xc] sm:$0xf] %v50_v3  ;;  %53 = vst [vmem:[#allocation2 + $0x10] sm:$0xf] %v52_v4  ;;  %v56_v6 = vld [vmem:[%s4287_s1 + $0xc] sm:$0xf] }
   0x5   :  { %55 = vst [vmem:[#allocation2 + $0x14] sm:$0xf] %v54_v5  ;;  %v58_v7 = vld [vmem:[%s4287_s1 + $0x1c] sm:$0xff]   ;;  %v62_v8 = vld [vmem:[%s4287_s1 + $0x30] sm:$0xf] }
   0x6   :  { %57 = vst [vmem:[#allocation2 + $0x18] sm:$0xf] %v56_v6  ;;  %59 = vst [vmem:[#allocation2 + $0x1c] sm:$0xff] %v58_v7   ;;  %v64_v9 = vld [vmem:[%s4287_s1 + $0x24] sm:$0xf]  ;;  %v74_v14 = vld [vmem:[%s4287_s1 + $0x3c] sm:$0xff]  }
   0x7   :  { %63 = vst [vmem:[#allocation2 + $0x24] sm:$0xf] %v62_v8  ;;  %v66_v10 = vld [vmem:[%s4287_s1 + $0x34] sm:$0xf]  ;;  %v68_v11 = vld [vmem:[%s4287_s1 + $0x28] sm:$0xf] }
   0x8   :  { %65 = vst [vmem:[#allocation2 + $0x28] sm:$0xf] %v64_v9  ;;  %67 = vst [vmem:[#allocation2 + $0x2c] sm:$0xf] %v66_v10  ;;  %v70_v12 = vld [vmem:[%s4287_s1 + $0x38] sm:$0xf] }
   0x9   :  { %69 = vst [vmem:[#allocation2 + $0x30] sm:$0xf] %v68_v11  ;;  %v72_v13 = vld [vmem:[%s4287_s1 + $0x2c] sm:$0xf]  ;;  %71 = vst [vmem:[#allocation2 + $0x34] sm:$0xf] %v70_v12 }
   0xa   :  { %73 = vst [vmem:[#allocation2 + $0x38] sm:$0xf] %v72_v13  ;;  %75 = vst [vmem:[#allocation2 + $0x3c] sm:$0xff] %v74_v14   ;;  %v78_v15 = vld [vmem:[%s4287_s1 + $0x50] sm:$0xf]  ;;  %v90_v21 = vld [vmem:[%s4287_s1 + $0x5c] sm:$0xff]  }
   0xb   :  { %v80_v16 = vld [vmem:[%s4287_s1 + $0x44] sm:$0xf]  ;;  %v82_v17 = vld [vmem:[%s4287_s1 + $0x54] sm:$0xf]  ;;  %79 = vst [vmem:[#allocation2 + $0x44] sm:$0xf] %v78_v15 }
   0xc   :  { %81 = vst [vmem:[#allocation2 + $0x48] sm:$0xf] %v80_v16  ;;  %83 = vst [vmem:[#allocation2 + $0x4c] sm:$0xf] %v82_v17  ;;  %v84_v18 = vld [vmem:[%s4287_s1 + $0x48] sm:$0xf] }
   0xd   :  { %v86_v19 = vld [vmem:[%s4287_s1 + $0x58] sm:$0xf]  ;;  %v88_v20 = vld [vmem:[%s4287_s1 + $0x4c] sm:$0xf]  ;;  %85 = vst [vmem:[#allocation2 + $0x50] sm:$0xf] %v84_v18 }
   0xe   :  { %87 = vst [vmem:[#allocation2 + $0x54] sm:$0xf] %v86_v19  ;;  %89 = vst [vmem:[#allocation2 + $0x58] sm:$0xf] %v88_v20  ;;  %v94_v22 = vld [vmem:[%s4287_s1 + $0x70] sm:$0xf] }
   0xf   :  { %v96_v23 = vld [vmem:[%s4287_s1 + $0x64] sm:$0xf]  ;;  %91 = vst [vmem:[#allocation2 + $0x5c] sm:$0xff] %v90_v21   ;;  %95 = vst [vmem:[#allocation2 + $0x64] sm:$0xf] %v94_v22  ;;  %v106_v28 = vld [vmem:[%s4287_s1 + $0x7c] sm:$0xff]  }
  0x10   :  { %97 = vst [vmem:[#allocation2 + $0x68] sm:$0xf] %v96_v23  ;;  %v98_v24 = vld [vmem:[%s4287_s1 + $0x74] sm:$0xf]  ;;  %v100_v25 = vld [vmem:[%s4287_s1 + $0x68] sm:$0xf] }
  0x11   :  { %v102_v26 = vld [vmem:[%s4287_s1 + $0x78] sm:$0xf]  ;;  %99 = vst [vmem:[#allocation2 + $0x6c] sm:$0xf] %v98_v24  ;;  %101 = vst [vmem:[#allocation2 + $0x70] sm:$0xf] %v100_v25 }
  0x12   :  { %103 = vst [vmem:[#allocation2 + $0x74] sm:$0xf] %v102_v26  ;;  %v104_v27 = vld [vmem:[%s4287_s1 + $0x6c] sm:$0xf]  ;;  %v110_v29 = vld [vmem:[%s4287_s1 + $0x90] sm:$0xf] }
  0x13   :  { %105 = vst [vmem:[#allocation2 + $0x78] sm:$0xf] %v104_v27  ;;  %107 = vst [vmem:[#allocation2 + $0x7c] sm:$0xff] %v106_v28   ;;  %v112_v30 = vld [vmem:[%s4287_s1 + $0x84] sm:$0xf]  ;;  %v122_v35 = vld [vmem:[%s4287_s1 + $0x9c] sm:$0xff]  }
  0x14   :  { %111 = vst [vmem:[#allocation2 + $0x84] sm:$0xf] %v110_v29  ;;  %v114_v31 = vld [vmem:[%s4287_s1 + $0x94] sm:$0xf]  ;;  %v116_v32 = vld [vmem:[%s4287_s1 + $0x88] sm:$0xf] }
  0x15   :  { %113 = vst [vmem:[#allocation2 + $0x88] sm:$0xf] %v112_v30  ;;  %115 = vst [vmem:[#allocation2 + $0x8c] sm:$0xf] %v114_v31  ;;  %v118_v33 = vld [vmem:[%s4287_s1 + $0x98] sm:$0xf] }
  0x16   :  { %117 = vst [vmem:[#allocation2 + $0x90] sm:$0xf] %v116_v32  ;;  %v120_v34 = vld [vmem:[%s4287_s1 + $0x8c] sm:$0xf]  ;;  %119 = vst [vmem:[#allocation2 + $0x94] sm:$0xf] %v118_v33 }
  0x17   :  { %121 = vst [vmem:[#allocation2 + $0x98] sm:$0xf] %v120_v34  ;;  %123 = vst [vmem:[#allocation2 + $0x9c] sm:$0xff] %v122_v35   ;;  %v126_v36 = vld [vmem:[%s4287_s1 + $0xb0] sm:$0xf]  ;;  %v138_v42 = vld [vmem:[%s4287_s1 + $0xbc] sm:$0xff]  }
  0x18   :  { %v128_v37 = vld [vmem:[%s4287_s1 + $0xa4] sm:$0xf]  ;;  %v130_v38 = vld [vmem:[%s4287_s1 + $0xb4] sm:$0xf]  ;;  %127 = vst [vmem:[#allocation2 + $0xa4] sm:$0xf] %v126_v36 }
  0x19   :  { %129 = vst [vmem:[#allocation2 + $0xa8] sm:$0xf] %v128_v37  ;;  %131 = vst [vmem:[#allocation2 + $0xac] sm:$0xf] %v130_v38  ;;  %v132_v39 = vld [vmem:[%s4287_s1 + $0xa8] sm:$0xf] }
  0x1a   :  { %v134_v40 = vld [vmem:[%s4287_s1 + $0xb8] sm:$0xf]  ;;  %v136_v41 = vld [vmem:[%s4287_s1 + $0xac] sm:$0xf]  ;;  %133 = vst [vmem:[#allocation2 + $0xb0] sm:$0xf] %v132_v39 }
  0x1b   :  { %135 = vst [vmem:[#allocation2 + $0xb4] sm:$0xf] %v134_v40  ;;  %137 = vst [vmem:[#allocation2 + $0xb8] sm:$0xf] %v136_v41  ;;  %v142_v43 = vld [vmem:[%s4287_s1 + $0xd0] sm:$0xf] }
  0x1c   :  { %v144_v44 = vld [vmem:[%s4287_s1 + $0xc4] sm:$0xf]  ;;  %139 = vst [vmem:[#allocation2 + $0xbc] sm:$0xff] %v138_v42   ;;  %143 = vst [vmem:[#allocation2 + $0xc4] sm:$0xf] %v142_v43  ;;  %v154_v49 = vld [vmem:[%s4287_s1 + $0xdc] sm:$0xff]  }
  0x1d   :  { %145 = vst [vmem:[#allocation2 + $0xc8] sm:$0xf] %v144_v44  ;;  %v146_v45 = vld [vmem:[%s4287_s1 + $0xd4] sm:$0xf]  ;;  %v148_v46 = vld [vmem:[%s4287_s1 + $0xc8] sm:$0xf] }
  0x1e   :  { %v150_v47 = vld [vmem:[%s4287_s1 + $0xd8] sm:$0xf]  ;;  %147 = vst [vmem:[#allocation2 + $0xcc] sm:$0xf] %v146_v45  ;;  %149 = vst [vmem:[#allocation2 + $0xd0] sm:$0xf] %v148_v46 }
  0x1f   :  { %151 = vst [vmem:[#allocation2 + $0xd4] sm:$0xf] %v150_v47  ;;  %v152_v48 = vld [vmem:[%s4287_s1 + $0xcc] sm:$0xf]  ;;  %v158_v50 = vld [vmem:[%s4287_s1 + $0xf0] sm:$0xf] }
  0x20   :  { %153 = vst [vmem:[#allocation2 + $0xd8] sm:$0xf] %v152_v48  ;;  %155 = vst [vmem:[#allocation2 + $0xdc] sm:$0xff] %v154_v49   ;;  %v160_v51 = vld [vmem:[%s4287_s1 + $0xe4] sm:$0xf] }
  0x21   :  { %159 = vst [vmem:[#allocation2 + $0xe4] sm:$0xf] %v158_v50  ;;  %v162_v52 = vld [vmem:[%s4287_s1 + $0xf4] sm:$0xf]  ;;  %v164_v53 = vld [vmem:[%s4287_s1 + $0xe8] sm:$0xf] }
  0x22   :  { %161 = vst [vmem:[#allocation2 + $0xe8] sm:$0xf] %v160_v51  ;;  %163 = vst [vmem:[#allocation2 + $0xec] sm:$0xf] %v162_v52  ;;  %v166_v54 = vld [vmem:[%s4287_s1 + $0xf8] sm:$0xf] }
  0x23   :  { %165 = vst [vmem:[#allocation2 + $0xf0] sm:$0xf] %v164_v53  ;;  %v168_v55 = vld [vmem:[%s4287_s1 + $0xec] sm:$0xf]  ;;  %v170_v56 = vld [vmem:[%s4287_s1 + $0xfc] sm:$0xf] }
  0x24   :  { %167 = vst [vmem:[#allocation2 + $0xf4] sm:$0xf] %v166_v54  ;;  %169 = vst [vmem:[#allocation2 + $0xf8] sm:$0xf] %v168_v55 }
  0x25   :  { %171 = vst [vmem:[#allocation2 + $0xfc] sm:$0xf] %v170_v56 }
  0x26   :  { %330 = vsyncadd [#allocation7], 4096 }
  0x27   :  { %3275 = dma.done.wait [#allocation7], 4096 }
  0x28   :  { %3276 = vsyncadd [#allocation7], 4294963200 }
  0x29   :  { %v352_v57 = vld [vmem:[%s4289_s3] sm:$0xf]  ;;  %v354_v58 = vld [vmem:[%s4289_s3 + $0x10] sm:$0xf]  ;;  %v356_v59 = vld [vmem:[%s4289_s3 + $0x4] sm:$0xf] }
  0x2a   :  { %353 = vst [vmem:[#allocation3] sm:$0xf] %v352_v57  ;;  %355 = vst [vmem:[#allocation3 + $0x4] sm:$0xf] %v354_v58  ;;  %v358_v60 = vld [vmem:[%s4289_s3 + $0x14] sm:$0xf] }
  0x2b   :  { %357 = vst [vmem:[#allocation3 + $0x8] sm:$0xf] %v356_v59  ;;  %v360_v61 = vld [vmem:[%s4289_s3 + $0x8] sm:$0xf]  ;;  %v362_v62 = vld [vmem:[%s4289_s3 + $0x18] sm:$0xf] }
  0x2c   :  { %359 = vst [vmem:[#allocation3 + $0xc] sm:$0xf] %v358_v60  ;;  %361 = vst [vmem:[#allocation3 + $0x10] sm:$0xf] %v360_v61  ;;  %v364_v63 = vld [vmem:[%s4289_s3 + $0xc] sm:$0xf] }
  0x2d   :  { %363 = vst [vmem:[#allocation3 + $0x14] sm:$0xf] %v362_v62  ;;  %v366_v0 = vld [vmem:[%s4289_s3 + $0x1c] sm:$0xff]   ;;  %v370_v1 = vld [vmem:[%s4289_s3 + $0x30] sm:$0xf] }
  0x2e   :  { %365 = vst [vmem:[#allocation3 + $0x18] sm:$0xf] %v364_v63  ;;  %367 = vst [vmem:[#allocation3 + $0x1c] sm:$0xff] %v366_v0   ;;  %v372_v2 = vld [vmem:[%s4289_s3 + $0x24] sm:$0xf]  ;;  %v382_v7 = vld [vmem:[%s4289_s3 + $0x3c] sm:$0xff]  }
  0x2f   :  { %371 = vst [vmem:[#allocation3 + $0x24] sm:$0xf] %v370_v1  ;;  %v374_v3 = vld [vmem:[%s4289_s3 + $0x34] sm:$0xf]  ;;  %v376_v4 = vld [vmem:[%s4289_s3 + $0x28] sm:$0xf] }
  0x30   :  { %373 = vst [vmem:[#allocation3 + $0x28] sm:$0xf] %v372_v2  ;;  %375 = vst [vmem:[#allocation3 + $0x2c] sm:$0xf] %v374_v3  ;;  %v378_v5 = vld [vmem:[%s4289_s3 + $0x38] sm:$0xf] }
  0x31   :  { %377 = vst [vmem:[#allocation3 + $0x30] sm:$0xf] %v376_v4  ;;  %v380_v6 = vld [vmem:[%s4289_s3 + $0x2c] sm:$0xf]  ;;  %379 = vst [vmem:[#allocation3 + $0x34] sm:$0xf] %v378_v5 }
  0x32   :  { %381 = vst [vmem:[#allocation3 + $0x38] sm:$0xf] %v380_v6  ;;  %383 = vst [vmem:[#allocation3 + $0x3c] sm:$0xff] %v382_v7   ;;  %v386_v8 = vld [vmem:[%s4289_s3 + $0x50] sm:$0xf]  ;;  %v398_v14 = vld [vmem:[%s4289_s3 + $0x5c] sm:$0xff]  }
  0x33   :  { %v388_v9 = vld [vmem:[%s4289_s3 + $0x44] sm:$0xf]  ;;  %v390_v10 = vld [vmem:[%s4289_s3 + $0x54] sm:$0xf]  ;;  %387 = vst [vmem:[#allocation3 + $0x44] sm:$0xf] %v386_v8 }
  0x34   :  { %389 = vst [vmem:[#allocation3 + $0x48] sm:$0xf] %v388_v9  ;;  %391 = vst [vmem:[#allocation3 + $0x4c] sm:$0xf] %v390_v10  ;;  %v392_v11 = vld [vmem:[%s4289_s3 + $0x48] sm:$0xf] }
  0x35   :  { %v394_v12 = vld [vmem:[%s4289_s3 + $0x58] sm:$0xf]  ;;  %v396_v13 = vld [vmem:[%s4289_s3 + $0x4c] sm:$0xf]  ;;  %393 = vst [vmem:[#allocation3 + $0x50] sm:$0xf] %v392_v11 }
  0x36   :  { %395 = vst [vmem:[#allocation3 + $0x54] sm:$0xf] %v394_v12  ;;  %397 = vst [vmem:[#allocation3 + $0x58] sm:$0xf] %v396_v13  ;;  %v402_v15 = vld [vmem:[%s4289_s3 + $0x70] sm:$0xf] }
  0x37   :  { %v404_v16 = vld [vmem:[%s4289_s3 + $0x64] sm:$0xf]  ;;  %399 = vst [vmem:[#allocation3 + $0x5c] sm:$0xff] %v398_v14   ;;  %403 = vst [vmem:[#allocation3 + $0x64] sm:$0xf] %v402_v15  ;;  %v414_v21 = vld [vmem:[%s4289_s3 + $0x7c] sm:$0xff]  }
  0x38   :  { %405 = vst [vmem:[#allocation3 + $0x68] sm:$0xf] %v404_v16  ;;  %v406_v17 = vld [vmem:[%s4289_s3 + $0x74] sm:$0xf]  ;;  %v408_v18 = vld [vmem:[%s4289_s3 + $0x68] sm:$0xf] }
  0x39   :  { %v410_v19 = vld [vmem:[%s4289_s3 + $0x78] sm:$0xf]  ;;  %407 = vst [vmem:[#allocation3 + $0x6c] sm:$0xf] %v406_v17  ;;  %409 = vst [vmem:[#allocation3 + $0x70] sm:$0xf] %v408_v18 }
  0x3a   :  { %411 = vst [vmem:[#allocation3 + $0x74] sm:$0xf] %v410_v19  ;;  %v412_v20 = vld [vmem:[%s4289_s3 + $0x6c] sm:$0xf]  ;;  %v418_v22 = vld [vmem:[%s4289_s3 + $0x90] sm:$0xf] }
  0x3b   :  { %413 = vst [vmem:[#allocation3 + $0x78] sm:$0xf] %v412_v20  ;;  %415 = vst [vmem:[#allocation3 + $0x7c] sm:$0xff] %v414_v21   ;;  %v420_v23 = vld [vmem:[%s4289_s3 + $0x84] sm:$0xf]  ;;  %v430_v28 = vld [vmem:[%s4289_s3 + $0x9c] sm:$0xff]  }
  0x3c   :  { %419 = vst [vmem:[#allocation3 + $0x84] sm:$0xf] %v418_v22  ;;  %v422_v24 = vld [vmem:[%s4289_s3 + $0x94] sm:$0xf]  ;;  %v424_v25 = vld [vmem:[%s4289_s3 + $0x88] sm:$0xf] }
  0x3d   :  { %421 = vst [vmem:[#allocation3 + $0x88] sm:$0xf] %v420_v23  ;;  %423 = vst [vmem:[#allocation3 + $0x8c] sm:$0xf] %v422_v24  ;;  %v426_v26 = vld [vmem:[%s4289_s3 + $0x98] sm:$0xf] }
  0x3e   :  { %425 = vst [vmem:[#allocation3 + $0x90] sm:$0xf] %v424_v25  ;;  %v428_v27 = vld [vmem:[%s4289_s3 + $0x8c] sm:$0xf]  ;;  %427 = vst [vmem:[#allocation3 + $0x94] sm:$0xf] %v426_v26 }
  0x3f   :  { %429 = vst [vmem:[#allocation3 + $0x98] sm:$0xf] %v428_v27  ;;  %431 = vst [vmem:[#allocation3 + $0x9c] sm:$0xff] %v430_v28   ;;  %v434_v29 = vld [vmem:[%s4289_s3 + $0xb0] sm:$0xf]  ;;  %v446_v35 = vld [vmem:[%s4289_s3 + $0xbc] sm:$0xff]  }
  0x40   :  { %v436_v30 = vld [vmem:[%s4289_s3 + $0xa4] sm:$0xf]  ;;  %v438_v31 = vld [vmem:[%s4289_s3 + $0xb4] sm:$0xf]  ;;  %435 = vst [vmem:[#allocation3 + $0xa4] sm:$0xf] %v434_v29 }
  0x41   :  { %437 = vst [vmem:[#allocation3 + $0xa8] sm:$0xf] %v436_v30  ;;  %439 = vst [vmem:[#allocation3 + $0xac] sm:$0xf] %v438_v31  ;;  %v440_v32 = vld [vmem:[%s4289_s3 + $0xa8] sm:$0xf] }
  0x42   :  { %v442_v33 = vld [vmem:[%s4289_s3 + $0xb8] sm:$0xf]  ;;  %v444_v34 = vld [vmem:[%s4289_s3 + $0xac] sm:$0xf]  ;;  %441 = vst [vmem:[#allocation3 + $0xb0] sm:$0xf] %v440_v32 }
  0x43   :  { %443 = vst [vmem:[#allocation3 + $0xb4] sm:$0xf] %v442_v33  ;;  %445 = vst [vmem:[#allocation3 + $0xb8] sm:$0xf] %v444_v34  ;;  %v450_v36 = vld [vmem:[%s4289_s3 + $0xd0] sm:$0xf] }
  0x44   :  { %v452_v37 = vld [vmem:[%s4289_s3 + $0xc4] sm:$0xf]  ;;  %447 = vst [vmem:[#allocation3 + $0xbc] sm:$0xff] %v446_v35   ;;  %451 = vst [vmem:[#allocation3 + $0xc4] sm:$0xf] %v450_v36  ;;  %v462_v42 = vld [vmem:[%s4289_s3 + $0xdc] sm:$0xff]  }
  0x45   :  { %453 = vst [vmem:[#allocation3 + $0xc8] sm:$0xf] %v452_v37  ;;  %v454_v38 = vld [vmem:[%s4289_s3 + $0xd4] sm:$0xf]  ;;  %v456_v39 = vld [vmem:[%s4289_s3 + $0xc8] sm:$0xf] }
  0x46   :  { %v458_v40 = vld [vmem:[%s4289_s3 + $0xd8] sm:$0xf]  ;;  %455 = vst [vmem:[#allocation3 + $0xcc] sm:$0xf] %v454_v38  ;;  %457 = vst [vmem:[#allocation3 + $0xd0] sm:$0xf] %v456_v39 }
  0x47   :  { %459 = vst [vmem:[#allocation3 + $0xd4] sm:$0xf] %v458_v40  ;;  %v460_v41 = vld [vmem:[%s4289_s3 + $0xcc] sm:$0xf]  ;;  %v466_v43 = vld [vmem:[%s4289_s3 + $0xf0] sm:$0xf] }
  0x48   :  { %461 = vst [vmem:[#allocation3 + $0xd8] sm:$0xf] %v460_v41  ;;  %463 = vst [vmem:[#allocation3 + $0xdc] sm:$0xff] %v462_v42   ;;  %v468_v44 = vld [vmem:[%s4289_s3 + $0xe4] sm:$0xf] }
  0x49   :  { %467 = vst [vmem:[#allocation3 + $0xe4] sm:$0xf] %v466_v43  ;;  %v470_v45 = vld [vmem:[%s4289_s3 + $0xf4] sm:$0xf]  ;;  %v472_v46 = vld [vmem:[%s4289_s3 + $0xe8] sm:$0xf] }
  0x4a   :  { %469 = vst [vmem:[#allocation3 + $0xe8] sm:$0xf] %v468_v44  ;;  %471 = vst [vmem:[#allocation3 + $0xec] sm:$0xf] %v470_v45  ;;  %v474_v47 = vld [vmem:[%s4289_s3 + $0xf8] sm:$0xf] }
  0x4b   :  { %473 = vst [vmem:[#allocation3 + $0xf0] sm:$0xf] %v472_v46  ;;  %v476_v48 = vld [vmem:[%s4289_s3 + $0xec] sm:$0xf]  ;;  %v478_v49 = vld [vmem:[%s4289_s3 + $0xfc] sm:$0xf] }
  0x4c   :  { %475 = vst [vmem:[#allocation3 + $0xf4] sm:$0xf] %v474_v47  ;;  %477 = vst [vmem:[#allocation3 + $0xf8] sm:$0xf] %v476_v48 }
  0x4d   :  { %479 = vst [vmem:[#allocation3 + $0xfc] sm:$0xf] %v478_v49 }
  0x4e   :  { %638 = vsyncadd [#allocation9], 4096 }
  0x4f   :  { %3277 = dma.done.wait [#allocation9], 4096 }
  0x50   :  { %3278 = vsyncadd [#allocation9], 4294963200  ;;  %v668_v50 = vld [vmem:[#allocation2 + $0x8] sm:$0xff]  ;;  %v670_v51 = vld [vmem:[#allocation2 + $0x18] sm:$0xff]  ;;  %v3279_v60 = vmov 0  }
  0x51   :  { %v667_v52 = vld [vmem:[#allocation2] sm:$0xff]  ;;  %769 = vmatprep.subr.bf16.mxu0 %v668_v50  ;;  %882 = vmatprep.subr.bf16.mxu1 %v670_v51  ;;  %v669_v53 = vld [vmem:[#allocation2 + $0x10] sm:$0xff]  ;;  %v672_v54 = vld [vmem:[#allocation2 + $0x28] sm:$0xff] }
  0x52   :  { %v674_v55 = vld [vmem:[#allocation2 + $0x38] sm:$0xff]  ;;  %770 = vmatpush1.bf16.msra.mxu0 %v667_v52  ;;  %883 = vmatpush1.bf16.msra.mxu1 %v669_v53  ;;  %v671_v56 = vld [vmem:[#allocation2 + $0x20] sm:$0xff]  ;;  %v673_v57 = vld [vmem:[#allocation2 + $0x30] sm:$0xff] }
  0x53   :  { %771 = vmatprep.subr.bf16.mxu0 %v672_v54  ;;  %884 = vmatprep.subr.bf16.mxu1 %v674_v55  ;;  %v676_v58 = vld [vmem:[#allocation2 + $0x48] sm:$0xff]  ;;  %v678_v59 = vld [vmem:[#allocation2 + $0x58] sm:$0xff]  ;;  %v675_v61 = vld [vmem:[#allocation2 + $0x40] sm:$0xff] }
  0x54   :  { %801 = vmatprep.mubr.bf16.mxu0 %v3279_v60  ;;  %914 = vmatprep.mubr.bf16.mxu1 %v3279_v60  ;;  %v677_v62 = vld [vmem:[#allocation2 + $0x50] sm:$0xff]  ;;  %v680_v63 = vld [vmem:[#allocation2 + $0x68] sm:$0xff]  ;;  %v682_v0 = vld [vmem:[#allocation2 + $0x78] sm:$0xff] }
  0x55   :  { %v679_v1 = vld [vmem:[#allocation2 + $0x60] sm:$0xff]  ;;  %v681_v2 = vld [vmem:[#allocation2 + $0x70] sm:$0xff]  ;;  %v684_v3 = vld [vmem:[#allocation2 + $0x88] sm:$0xff] }
  0x56   :  { %772 = vmatpush1.bf16.msra.mxu0 %v671_v56  ;;  %885 = vmatpush1.bf16.msra.mxu1 %v673_v57  ;;  %v686_v4 = vld [vmem:[#allocation2 + $0x98] sm:$0xff]  ;;  %v683_v5 = vld [vmem:[#allocation2 + $0x80] sm:$0xff]  ;;  %v685_v6 = vld [vmem:[#allocation2 + $0x90] sm:$0xff] }
  0x57   :  { %773 = vmatprep.subr.bf16.mxu0 %v676_v58  ;;  %886 = vmatprep.subr.bf16.mxu1 %v678_v59  ;;  %v688_v7 = vld [vmem:[#allocation2 + $0xa8] sm:$0xff]  ;;  %v690_v8 = vld [vmem:[#allocation2 + $0xb8] sm:$0xff]  ;;  %v687_v9 = vld [vmem:[#allocation2 + $0xa0] sm:$0xff] }
  0x58   :  { %v689_v10 = vld [vmem:[#allocation2 + $0xb0] sm:$0xff]  ;;  %v692_v11 = vld [vmem:[#allocation2 + $0xc8] sm:$0xff]  ;;  %v694_v12 = vld [vmem:[#allocation2 + $0xd8] sm:$0xff] }
  0x59   :  { %v691_v13 = vld [vmem:[#allocation2 + $0xc0] sm:$0xff]  ;;  %v693_v14 = vld [vmem:[#allocation2 + $0xd0] sm:$0xff]  ;;  %v696_v15 = vld [vmem:[#allocation2 + $0xe8] sm:$0xff] }
  0x5a   :  { %774 = vmatpush1.bf16.msra.mxu0 %v675_v61  ;;  %887 = vmatpush1.bf16.msra.mxu1 %v677_v62  ;;  %v698_v16 = vld [vmem:[#allocation2 + $0xf8] sm:$0xff]  ;;  %v695_v17 = vld [vmem:[#allocation2 + $0xe0] sm:$0xff]  ;;  %v697_v18 = vld [vmem:[#allocation2 + $0xf0] sm:$0xff] }
  0x5b   :  { %775 = vmatprep.subr.bf16.mxu0 %v680_v63  ;;  %888 = vmatprep.subr.bf16.mxu1 %v682_v0  ;;  %v3669_v19 = vld [vmem:[#allocation3 + $0x8] sm:$0xff]  ;;  %v3671_v20 = vld [vmem:[#allocation3 + $0x18] sm:$0xff]  ;;  %v3011_v21 = vld [vmem:[%s4286_s0] sm:$0xff]   ;;  %v701_v63 = vlaneseq }
  0x5c   :  { %v3677_v22 = vld [vmem:[#allocation3] sm:$0xff]  ;;  %v3680_v23 = vld [vmem:[#allocation3 + $0x28] sm:$0xff]  ;;  %v3682_v24 = vld [vmem:[#allocation3 + $0x10] sm:$0xff] }
  0x5d   :  { %v3686_v25 = vld [vmem:[#allocation3 + $0x38] sm:$0xff]  ;;  %v3690_v26 = vld [vmem:[#allocation3 + $0x20] sm:$0xff]  ;;  %v3692_v27 = vld [vmem:[#allocation3 + $0x48] sm:$0xff]  ;;  %v702_v0 = vshrl.u32 %v701_v63, 7 }
  0x5e   :  { %776 = vmatpush1.bf16.msra.mxu0 %v679_v1  ;;  %889 = vmatpush1.bf16.msra.mxu1 %v681_v2  ;;  %v3012_v28 = vld [vmem:[%s4286_s0 + $0x8] sm:$0xff]   ;;  %v3699_v29 = vld [vmem:[#allocation3 + $0x30] sm:$0xff]  ;;  %v3703_v30 = vld [vmem:[#allocation3 + $0x40] sm:$0xff] }
  0x5f   :  { %777 = vmatprep.subr.bf16.mxu0 %v684_v3  ;;  %890 = vmatprep.subr.bf16.mxu1 %v686_v4  ;;  %v3706_v31 = vld [vmem:[#allocation3 + $0x58] sm:$0xff]  ;;  %v3708_v32 = vld [vmem:[#allocation3 + $0x68] sm:$0xff]  ;;  %v3710_v33 = vld [vmem:[#allocation3 + $0x50] sm:$0xff]  ;;  %v703_v1 = vsub.s32 0, %v702_v0  ;;  %v707_v3 = vsub.s32 1, %v702_v0 }
  0x60   :  { %v3714_v34 = vld [vmem:[#allocation3 + $0x78] sm:$0xff]  ;;  %v3719_v35 = vld [vmem:[#allocation3 + $0x60] sm:$0xff]  ;;  %v3013_v36 = vld [vmem:[%s4286_s0 + $0x10] sm:$0xff]  }
  0x61   :  { %v3725_v37 = vld [vmem:[#allocation3 + $0x88] sm:$0xff]  ;;  %v3728_v38 = vld [vmem:[#allocation3 + $0x70] sm:$0xff]  ;;  %v3732_v39 = vld [vmem:[#allocation3 + $0x80] sm:$0xff] }
  0x62   :  { %778 = vmatpush1.bf16.msra.mxu0 %v683_v5  ;;  %891 = vmatpush1.bf16.msra.mxu1 %v685_v6  ;;  %v3735_v40 = vld [vmem:[#allocation3 + $0x98] sm:$0xff]  ;;  %v3737_v41 = vld [vmem:[#allocation3 + $0xa8] sm:$0xff]  ;;  %v3739_v42 = vld [vmem:[#allocation3 + $0x90] sm:$0xff] }
  0x63   :  { %779 = vmatprep.subr.bf16.mxu0 %v688_v7  ;;  %892 = vmatprep.subr.bf16.mxu1 %v690_v8  ;;  %v3743_v43 = vld [vmem:[#allocation3 + $0xb8] sm:$0xff]  ;;  %v3748_v44 = vld [vmem:[#allocation3 + $0xa0] sm:$0xff]  ;;  %v3754_v46 = vld [vmem:[#allocation3 + $0xc8] sm:$0xff]  ;;  %v715_v8 = vsub.s32 3, %v702_v0 }
  0x64   :  { %v3014_v45 = vld [vmem:[%s4286_s0 + $0x18] sm:$0xff]   ;;  %v3757_v47 = vld [vmem:[#allocation3 + $0xb0] sm:$0xff]  ;;  %v3761_v48 = vld [vmem:[#allocation3 + $0xc0] sm:$0xff] }
  0x65   :  { %v3764_v49 = vld [vmem:[#allocation3 + $0xd8] sm:$0xff]  ;;  %v3766_v50 = vld [vmem:[#allocation3 + $0xe8] sm:$0xff]  ;;  %v3768_v51 = vld [vmem:[#allocation3 + $0xd0] sm:$0xff] }
  0x66   :  { %780 = vmatpush1.bf16.msra.mxu0 %v687_v9  ;;  %893 = vmatpush1.bf16.msra.mxu1 %v689_v10  ;;  %v3772_v52 = vld [vmem:[#allocation3 + $0xf8] sm:$0xff]  ;;  %v3777_v53 = vld [vmem:[#allocation3 + $0xe0] sm:$0xff]  ;;  %v3784_v55 = vld [vmem:[#allocation3 + $0xf0] sm:$0xff] }
  0x67   :  { %781 = vmatprep.subr.bf16.mxu0 %v692_v11  ;;  %894 = vmatprep.subr.bf16.mxu1 %v694_v12  ;;  %v3015_v54 = vld [vmem:[%s4286_s0 + $0x20] sm:$0xff]   ;;  %v3016_v56 = vld [vmem:[%s4286_s0 + $0x28] sm:$0xff]   ;;  %v3017_v57 = vld [vmem:[%s4286_s0 + $0x30] sm:$0xff]  }
  0x68   :  { %v3018_v58 = vld [vmem:[%s4286_s0 + $0x38] sm:$0xff]   ;;  %v643_v59 = vld [vmem:[%s4290_s4] sm:$0xff]  ;;  %v644_v61 = vld [vmem:[%s4290_s4 + $0x8] sm:$0xff] }
  0x69   :  { %v645_v62 = vpack.c.bf16 %v644_v61, %v643_v59  ;;  %v699_v2 = vld [vmem:[%s4288_s2] sm:$0xf] }
  0x6a   :  { %782 = vmatpush1.bf16.msra.mxu0 %v691_v13  ;;  %895 = vmatpush1.bf16.msra.mxu1 %v693_v14  ;;  %v3850_v4 = vrot.slane %v699_v2, %v703_v1  ;;  %v3852_v5 = vrot.slane %v699_v2, %v707_v3 }
  0x6b   :  { %783 = vmatprep.subr.bf16.mxu0 %v696_v15  ;;  %896 = vmatprep.subr.bf16.mxu1 %v698_v16  ;;  %v711_v16 = vsub.s32 2, %v702_v0 }
  0x6e   :  { %784 = vmatpush1.bf16.msra.mxu0 %v695_v17  ;;  %897 = vmatpush1.bf16.msra.mxu1 %v697_v18 }
  0x6f   :  { %1103 = vmatprep.subr.bf16.mxu0 %v3669_v19  ;;  %1146 = vmatprep.subr.bf16.mxu1 %v3671_v20 }
  0x71   :  { %802 = vmatmul.mubr.bf16.vlgmr.msra.gmra.mrb[0].mxu0 %v3011_v21  ;;  %915 = vmatmul.mubr.bf16.vlgmr.msra.gmra.mrb[0].mxu1 %v3011_v21 }
  0x72   :  { %1104 = vmatpush1.bf16.msra.mxu0 %v3677_v22  ;;  %811 = vmatprep.mubr.bf16.mxu0 %v3279_v60 }
  0x73   :  { %924 = vmatprep.mubr.bf16.mxu1 %v3279_v60  ;;  %1105 = vmatprep.subr.bf16.mxu0 %v3680_v23 }
  0x74   :  { %1147 = vmatpush1.bf16.msra.mxu1 %v3682_v24 }
  0x75   :  { %1148 = vmatprep.subr.bf16.mxu1 %v3686_v25 }
  0x76   :  { %1106 = vmatpush1.bf16.msra.mxu0 %v3690_v26 }
  0x77   :  { %1107 = vmatprep.subr.bf16.mxu0 %v3692_v27 }
  0x78   :  { %1149 = vmatpush1.bf16.msra.mxu1 %v3699_v29 }
  0x79   :  { %812 = vmatmul.mubr.bf16.gmra.mrb[4].mxu0 %v3012_v28  ;;  %925 = vmatmul.mubr.bf16.gmra.mrb[4].mxu1 %v3012_v28 }
  0x7a   :  { %821 = vmatprep.mubr.bf16.mxu0 %v3279_v60  ;;  %934 = vmatprep.mubr.bf16.mxu1 %v3279_v60 }
  0x7b   :  { %1108 = vmatpush1.bf16.msra.mxu0 %v3703_v30  ;;  %1150 = vmatprep.subr.bf16.mxu1 %v3706_v31 }
  0x7c   :  { %1109 = vmatprep.subr.bf16.mxu0 %v3708_v32  ;;  %1151 = vmatpush1.bf16.msra.mxu1 %v3710_v33 }
  0x7d   :  { %1152 = vmatprep.subr.bf16.mxu1 %v3714_v34 }
  0x7f   :  { %1110 = vmatpush1.bf16.msra.mxu0 %v3719_v35 }
  0x80   :  { %1111 = vmatprep.subr.bf16.mxu0 %v3725_v37  ;;  %1153 = vmatpush1.bf16.msra.mxu1 %v3728_v38 }
  0x81   :  { %822 = vmatmul.mubr.bf16.gmra.mrb[8].mxu0 %v3013_v36  ;;  %935 = vmatmul.mubr.bf16.gmra.mrb[8].mxu1 %v3013_v36  ;;  %v3857_v36 = vrot.slane %v699_v2, %v715_v8 }
  0x82   :  { %831 = vmatprep.mubr.bf16.mxu0 %v3279_v60  ;;  %944 = vmatprep.mubr.bf16.mxu1 %v3279_v60 }
  0x83   :  { %1112 = vmatpush1.bf16.msra.mxu0 %v3732_v39  ;;  %1154 = vmatprep.subr.bf16.mxu1 %v3735_v40 }
  0x84   :  { %1113 = vmatprep.subr.bf16.mxu0 %v3737_v41  ;;  %1155 = vmatpush1.bf16.msra.mxu1 %v3739_v42 }
  0x85   :  { %1156 = vmatprep.subr.bf16.mxu1 %v3743_v43 }
  0x87   :  { %1114 = vmatpush1.bf16.msra.mxu0 %v3748_v44 }
  0x88   :  { %1115 = vmatprep.subr.bf16.mxu0 %v3754_v46  ;;  %1157 = vmatpush1.bf16.msra.mxu1 %v3757_v47 }
  0x89   :  { %832 = vmatmul.mubr.bf16.gmra.mrb[12].mxu0 %v3014_v45  ;;  %945 = vmatmul.mubr.bf16.gmra.mrb[12].mxu1 %v3014_v45 }
  0x8a   :  { %841 = vmatprep.mubr.bf16.mxu0 %v3279_v60  ;;  %954 = vmatprep.mubr.bf16.mxu1 %v3279_v60 }
  0x8b   :  { %1116 = vmatpush1.bf16.msra.mxu0 %v3761_v48  ;;  %1158 = vmatprep.subr.bf16.mxu1 %v3764_v49 }
  0x8c   :  { %1117 = vmatprep.subr.bf16.mxu0 %v3766_v50  ;;  %1159 = vmatpush1.bf16.msra.mxu1 %v3768_v51 }
  0x8d   :  { %1160 = vmatprep.subr.bf16.mxu1 %v3772_v52 }
  0x8f   :  { %1118 = vmatpush1.bf16.msra.mxu0 %v3777_v53 }
  0x90   :  { %1161 = vmatpush1.bf16.msra.mxu1 %v3784_v55  ;;  %1304 = vmatprep.subr.bf16.mxu0 %v3669_v19 }
  0x91   :  { %842 = vmatmul.mubr.bf16.gmra.mrb[16].mxu0 %v3015_v54  ;;  %955 = vmatmul.mubr.bf16.gmra.mrb[16].mxu1 %v3015_v54 }
  0x92   :  { %851 = vmatprep.mubr.bf16.mxu0 %v3279_v60  ;;  %964 = vmatprep.mubr.bf16.mxu1 %v3279_v60 }
  0x93   :  { %1347 = vmatprep.subr.bf16.mxu1 %v3671_v20 }
  0x99   :  { %852 = vmatmul.mubr.bf16.gmra.mrb[20].mxu0 %v3016_v56  ;;  %965 = vmatmul.mubr.bf16.gmra.mrb[20].mxu1 %v3016_v56 }
  0x9a   :  { %861 = vmatprep.mubr.bf16.mxu0 %v3279_v60  ;;  %974 = vmatprep.mubr.bf16.mxu1 %v3279_v60 }
  0xa1   :  { %862 = vmatmul.mubr.bf16.gmra.mrb[24].mxu0 %v3017_v57  ;;  %975 = vmatmul.mubr.bf16.gmra.mrb[24].mxu1 %v3017_v57  ;;  %v3860_v57 = vrot.slane %v699_v2, %v711_v16 }
  0xa2   :  { %871 = vmatprep.mubr.bf16.mxu0 %v3279_v60  ;;  %984 = vmatprep.mubr.bf16.mxu1 %v3279_v60 }
  0xa9   :  { %872 = vmatmul.mubr.bf16.gmra.mrb[28].mxu0 %v3018_v58  ;;  %985 = vmatmul.mubr.bf16.gmra.mrb[28].mxu1 %v3018_v58 }
  0xaa   :  { %1135 = vmatprep.mubr.bf16.mxu0 %v3279_v60  ;;  %1178 = vmatprep.mubr.bf16.mxu1 %v3279_v60 }
  0xb1   :  { %1136 = vmatmul.mubr.bf16.vlgmr.msra.gmra.mrb[0].mxu0 %v645_v62  ;;  %1179 = vmatmul.mubr.bf16.vlgmr.msra.gmra.mrb[0].mxu1 %v645_v62 }
  0xb2   :  { %1305 = vmatpush1.bf16.msra.mxu0 %v3677_v22  ;;  %1348 = vmatpush1.bf16.msra.mxu1 %v3682_v24 }
  0xb3   :  { %1306 = vmatprep.subr.bf16.mxu0 %v3680_v23  ;;  %1349 = vmatprep.subr.bf16.mxu1 %v3686_v25 }
  0xb4   :  { %1336 = vmatprep.mubr.bf16.mxu0 %v3279_v60  ;;  %1379 = vmatprep.mubr.bf16.mxu1 %v3279_v60 }
  0xb6   :  { %1307 = vmatpush1.bf16.msra.mxu0 %v3690_v26  ;;  %1350 = vmatpush1.bf16.msra.mxu1 %v3699_v29 }
  0xb7   :  { %1308 = vmatprep.subr.bf16.mxu0 %v3692_v27  ;;  %1351 = vmatprep.subr.bf16.mxu1 %v3706_v31 }
  0xba   :  { %1309 = vmatpush1.bf16.msra.mxu0 %v3703_v30  ;;  %1352 = vmatpush1.bf16.msra.mxu1 %v3710_v33 }
  0xbb   :  { %1310 = vmatprep.subr.bf16.mxu0 %v3708_v32  ;;  %1353 = vmatprep.subr.bf16.mxu1 %v3714_v34 }
  0xbe   :  { %1311 = vmatpush1.bf16.msra.mxu0 %v3719_v35  ;;  %1354 = vmatpush1.bf16.msra.mxu1 %v3728_v38 }
  0xbf   :  { %1312 = vmatprep.subr.bf16.mxu0 %v3725_v37  ;;  %1355 = vmatprep.subr.bf16.mxu1 %v3735_v40 }
  0xc2   :  { %1313 = vmatpush1.bf16.msra.mxu0 %v3732_v39  ;;  %1356 = vmatpush1.bf16.msra.mxu1 %v3739_v42 }
  0xc3   :  { %1314 = vmatprep.subr.bf16.mxu0 %v3737_v41  ;;  %1357 = vmatprep.subr.bf16.mxu1 %v3743_v43 }
  0xc6   :  { %1315 = vmatpush1.bf16.msra.mxu0 %v3748_v44  ;;  %1358 = vmatpush1.bf16.msra.mxu1 %v3757_v47 }
  0xc7   :  { %1316 = vmatprep.subr.bf16.mxu0 %v3754_v46  ;;  %1359 = vmatprep.subr.bf16.mxu1 %v3764_v49 }
  0xca   :  { %1317 = vmatpush1.bf16.msra.mxu0 %v3761_v48  ;;  %1360 = vmatpush1.bf16.msra.mxu1 %v3768_v51 }
  0xcb   :  { %1318 = vmatprep.subr.bf16.mxu0 %v3766_v50  ;;  %1361 = vmatprep.subr.bf16.mxu1 %v3772_v52 }
  0xce   :  { %1319 = vmatpush1.bf16.msra.mxu0 %v3777_v53  ;;  %1362 = vmatpush1.bf16.msra.mxu1 %v3784_v55 }
  0xcf   :  { %1506 = vmatprep.subr.bf16.mxu0 %v3669_v19  ;;  %1549 = vmatprep.subr.bf16.mxu1 %v3671_v20 }
 0x184   :  { %v1137_v6 = vpop.f32.mrb[0].mxu0  ;;  %v1180_v7 = vpop.f32.mrb[0].mxu1 }
 0x185   :  { %v2882_v9 = vadd.f32 %v1137_v6, %v3850_v4  ;;  %v1139_v10 = vpop.f32.mrb[1].mxu0  ;;  %v1182_v11 = vpop.f32.mrb[1].mxu1  ;;  %v2914_v59 = vadd.f32 %v1180_v7, %v3860_v57 }
 0x186   :  { %v2883_v12 = vadd.f32 %v1139_v10, %v3852_v5  ;;  %v1141_v13 = vpop.f32.mrb[2].mxu0  ;;  %v1184_v14 = vpop.f32.mrb[2].mxu1  ;;  %v2915_v58 = vadd.f32 %v1182_v11, %v3857_v36 }
 0x187   :  { %v2741_v15 = vmul.f32 -1.442695, %v2882_v9  ;;  %v2884_v17 = vadd.f32 %v1141_v13, %v3850_v4  ;;  %v1143_v18 = vpop.f32.mrb[3].mxu0  ;;  %v1186_v21 = vpop.f32.mrb[3].mxu1  ;;  %v2916_v63 = vadd.f32 %v1184_v14, %v3860_v57  ;;  %v647_v14 = vld [vmem:[%s4291_s5] sm:$0xff] }
 0x188   :  { %v2743_v28 = vmul.f32 -1.442695, %v2883_v12  ;;  %v2885_v45 = vadd.f32 %v1143_v18, %v3852_v5  ;;  %v2745_v61 = vmul.f32 -1.442695, %v2915_v58  ;;  %v2917_v62 = vadd.f32 %v1186_v21, %v3857_v36 }
 0x189   :  { %3019 = vpow2.f32 %v2741_v15  ;;  %v2742_v54 = vmul.f32 -1.442695, %v2884_v17 }
 0x18a   :  { %3021 = vpow2.f32 %v2743_v28  ;;  %v2744_v56 = vmul.f32 -1.442695, %v2885_v45  ;;  %v2746_v6 = vmul.f32 -1.442695, %v2917_v62 }
 0x18b   :  { %3023 = vpow2.f32 %v2742_v54  ;;  %v648_v54 = vld [vmem:[%s4291_s5 + $0x8] sm:$0xff] }
 0x18c   :  { %3025 = vpow2.f32 %v2744_v56 }
 0x18d   :  { %3027 = vtanh.f32 %v2914_v59 }
 0x18e   :  { %3029 = vpow2.f32 %v2745_v61 }
 0x18f   :  { %3031 = vtanh.f32 %v2916_v63 }
 0x193   :  { %v3020_v0 = vpop.eup %3019 }
 0x194   :  { %v3022_v1 = vpop.eup %3021  ;;  %v1203_v3 = vadd.f32 1.0, %v3020_v0 }
 0x195   :  { %v1215_v8 = vadd.f32 1.0, %v3022_v1  ;;  %v3024_v2 = vpop.eup %3023 }
 0x196   :  { %3033 = vrcp.f32 %v1203_v3  ;;  %v1204_v9 = vadd.f32 1.0, %v3024_v2  ;;  %v3026_v10 = vpop.eup %3025 }
 0x197   :  { %3035 = vrcp.f32 %v1215_v8  ;;  %v1216_v7 = vadd.f32 1.0, %v3026_v10  ;;  %v3028_v11 = vpop.eup %3027 }
 0x198   :  { %3037 = vpow2.f32 %v2746_v6  ;;  %v3030_v12 = vpop.eup %3029 }
 0x199   :  { %3039 = vrcp.f32 %v1204_v9  ;;  %v3032_v13 = vpop.eup %3031  ;;  %v1229_v45 = vadd.f32 1.0, %v3030_v12 }
 0x19a   :  { %3041 = vrcp.f32 %v1216_v7 }
 0x19b   :  { %3043 = vrcp.f32 %v1229_v45 }
 0x1a0   :  { %v3034_v15 = vpop.eup %3033 }
 0x1a1   :  { %v3036_v16 = vpop.eup %3035  ;;  %v1239_v17 = vmul.f32 %v3034_v15, %v3028_v11 }
 0x1a2   :  { %v3038_v18 = vpop.eup %3037  ;;  %v1237_v21 = vmul.f32 %v3036_v16, %v647_v14 }
 0x1a3   :  { %v3040_v28 = vpop.eup %3039  ;;  %v1230_v61 = vadd.f32 1.0, %v3038_v18 }
 0x1a4   :  { %v3872_v56 = vadd.f32 %v1239_v17, %v1237_v21  ;;  %v1240_v58 = vmul.f32 %v3040_v28, %v3032_v13  ;;  %v3042_v59 = vpop.eup %3041 }
 0x1a5   :  { %v1238_v62 = vmul.f32 %v3042_v59, %v648_v54  ;;  %v3044_v0 = vpop.eup %3043 }
 0x1a6   :  { %3045 = vtanh.f32 %v3872_v56 }
 0x1a7   :  { %v3875_v63 = vadd.f32 %v1240_v58, %v1238_v62  ;;  %3047 = vrcp.f32 %v1230_v61 }
 0x1a9   :  { %3049 = vtanh.f32 %v3875_v63 }
 0x1b0   :  { %v3046_v1 = vpop.eup %3045 }
 0x1b1   :  { %v3048_v3 = vpop.eup %3047  ;;  %v1245_v8 = vmul.f32 %v3046_v1, %v3044_v0 }
 0x1b3   :  { %v3050_v6 = vpop.eup %3049 }
 0x1b4   :  { %v1246_v2 = vmul.f32 %v3050_v6, %v3048_v3 }
 0x1b6   :  { %v1247_v9 = vpack.c.bf16 %v1246_v2, %v1245_v8 }
 0x1b8   :  { %2839 = vst [vmem:[%s4292_s6] sm:$0xff] %v1247_v9   ;;  %1337 = vmatmul.mubr.bf16.vlgmr.msra.gmra.mrb[4].mxu0 %v1247_v9  ;;  %1380 = vmatmul.mubr.bf16.vlgmr.msra.gmra.mrb[4].mxu1 %v1247_v9 }
 0x1b9   :  { %1507 = vmatpush1.bf16.msra.mxu0 %v3677_v22  ;;  %1550 = vmatpush1.bf16.msra.mxu1 %v3682_v24 }
 0x1ba   :  { %1508 = vmatprep.subr.bf16.mxu0 %v3680_v23  ;;  %1551 = vmatprep.subr.bf16.mxu1 %v3686_v25 }
 0x1bb   :  { %1538 = vmatprep.mubr.bf16.mxu0 %v3279_v60  ;;  %1581 = vmatprep.mubr.bf16.mxu1 %v3279_v60 }
 0x1bd   :  { %1509 = vmatpush1.bf16.msra.mxu0 %v3690_v26  ;;  %1552 = vmatpush1.bf16.msra.mxu1 %v3699_v29 }
 0x1be   :  { %1510 = vmatprep.subr.bf16.mxu0 %v3692_v27  ;;  %1553 = vmatprep.subr.bf16.mxu1 %v3706_v31 }
 0x1c1   :  { %1511 = vmatpush1.bf16.msra.mxu0 %v3703_v30  ;;  %1554 = vmatpush1.bf16.msra.mxu1 %v3710_v33 }
 0x1c2   :  { %1512 = vmatprep.subr.bf16.mxu0 %v3708_v32  ;;  %1555 = vmatprep.subr.bf16.mxu1 %v3714_v34 }
 0x1c5   :  { %1513 = vmatpush1.bf16.msra.mxu0 %v3719_v35  ;;  %1556 = vmatpush1.bf16.msra.mxu1 %v3728_v38 }
 0x1c6   :  { %1514 = vmatprep.subr.bf16.mxu0 %v3725_v37  ;;  %1557 = vmatprep.subr.bf16.mxu1 %v3735_v40 }
 0x1c9   :  { %1515 = vmatpush1.bf16.msra.mxu0 %v3732_v39  ;;  %1558 = vmatpush1.bf16.msra.mxu1 %v3739_v42 }
 0x1ca   :  { %1516 = vmatprep.subr.bf16.mxu0 %v3737_v41  ;;  %1559 = vmatprep.subr.bf16.mxu1 %v3743_v43 }
 0x1cd   :  { %1517 = vmatpush1.bf16.msra.mxu0 %v3748_v44  ;;  %1560 = vmatpush1.bf16.msra.mxu1 %v3757_v47 }
 0x1ce   :  { %1518 = vmatprep.subr.bf16.mxu0 %v3754_v46  ;;  %1561 = vmatprep.subr.bf16.mxu1 %v3764_v49 }
 0x1d1   :  { %1519 = vmatpush1.bf16.msra.mxu0 %v3761_v48  ;;  %1562 = vmatpush1.bf16.msra.mxu1 %v3768_v51 }
 0x1d2   :  { %1520 = vmatprep.subr.bf16.mxu0 %v3766_v50  ;;  %1563 = vmatprep.subr.bf16.mxu1 %v3772_v52 }
 0x1d5   :  { %1521 = vmatpush1.bf16.msra.mxu0 %v3777_v53  ;;  %1564 = vmatpush1.bf16.msra.mxu1 %v3784_v55 }
 0x1d6   :  { %1708 = vmatprep.subr.bf16.mxu0 %v3669_v19  ;;  %1751 = vmatprep.subr.bf16.mxu1 %v3671_v20 }
 0x28b   :  { %v1338_v10 = vpop.f32.mrb[4].mxu0  ;;  %v1381_v7 = vpop.f32.mrb[4].mxu1 }
 0x28c   :  { %v2886_v11 = vadd.f32 %v1338_v10, %v3850_v4  ;;  %v1340_v12 = vpop.f32.mrb[5].mxu0  ;;  %v1383_v13 = vpop.f32.mrb[5].mxu1  ;;  %v2918_v59 = vadd.f32 %v1381_v7, %v3860_v57 }
 0x28d   :  { %v2887_v14 = vadd.f32 %v1340_v12, %v3852_v5  ;;  %v1342_v15 = vpop.f32.mrb[6].mxu0  ;;  %v1385_v16 = vpop.f32.mrb[6].mxu1  ;;  %v2919_v58 = vadd.f32 %v1383_v13, %v3857_v36 }
 0x28e   :  { %v2749_v17 = vmul.f32 -1.442695, %v2886_v11  ;;  %v2888_v18 = vadd.f32 %v1342_v15, %v3850_v4  ;;  %v1344_v21 = vpop.f32.mrb[7].mxu0  ;;  %v1387_v28 = vpop.f32.mrb[7].mxu1  ;;  %v2920_v0 = vadd.f32 %v1385_v16, %v3860_v57 }
 0x28f   :  { %v2751_v45 = vmul.f32 -1.442695, %v2887_v14  ;;  %v2889_v19 = vadd.f32 %v1344_v21, %v3852_v5  ;;  %v2753_v61 = vmul.f32 -1.442695, %v2919_v58  ;;  %v2921_v62 = vadd.f32 %v1387_v28, %v3857_v36 }
 0x290   :  { %3051 = vpow2.f32 %v2749_v17  ;;  %v2750_v20 = vmul.f32 -1.442695, %v2888_v18 }
 0x291   :  { %3053 = vpow2.f32 %v2751_v45  ;;  %v2752_v54 = vmul.f32 -1.442695, %v2889_v19  ;;  %v2754_v8 = vmul.f32 -1.442695, %v2921_v62 }
 0x292   :  { %3055 = vpow2.f32 %v2750_v20 }
 0x293   :  { %3057 = vpow2.f32 %v2752_v54 }
 0x294   :  { %3059 = vtanh.f32 %v2918_v59 }
 0x295   :  { %3061 = vpow2.f32 %v2753_v61 }
 0x296   :  { %3063 = vtanh.f32 %v2920_v0 }
 0x29a   :  { %v3052_v1 = vpop.eup %3051 }
 0x29b   :  { %v3054_v3 = vpop.eup %3053  ;;  %v1404_v6 = vadd.f32 1.0, %v3052_v1 }
 0x29c   :  { %v1416_v2 = vadd.f32 1.0, %v3054_v3  ;;  %v3056_v9 = vpop.eup %3055 }
 0x29d   :  { %3065 = vrcp.f32 %v1404_v6  ;;  %v1405_v10 = vadd.f32 1.0, %v3056_v9  ;;  %v3058_v11 = vpop.eup %3057 }
 0x29e   :  { %3067 = vrcp.f32 %v1416_v2  ;;  %v1417_v7 = vadd.f32 1.0, %v3058_v11  ;;  %v3060_v12 = vpop.eup %3059 }
 0x29f   :  { %3069 = vpow2.f32 %v2754_v8  ;;  %v3062_v13 = vpop.eup %3061 }
 0x2a0   :  { %3071 = vrcp.f32 %v1405_v10  ;;  %v3064_v14 = vpop.eup %3063  ;;  %v1430_v45 = vadd.f32 1.0, %v3062_v13 }
 0x2a1   :  { %3073 = vrcp.f32 %v1417_v7 }
 0x2a2   :  { %3075 = vrcp.f32 %v1430_v45 }
 0x2a7   :  { %v3066_v15 = vpop.eup %3065 }
 0x2a8   :  { %v3068_v16 = vpop.eup %3067  ;;  %v1440_v17 = vmul.f32 %v3066_v15, %v3060_v12 }
 0x2a9   :  { %v3070_v18 = vpop.eup %3069  ;;  %v1438_v21 = vmul.f32 %v3068_v16, %v3872_v56 }
 0x2aa   :  { %v3072_v28 = vpop.eup %3071  ;;  %v1431_v58 = vadd.f32 1.0, %v3070_v18 }
 0x2ab   :  { %v3924_v19 = vadd.f32 %v1440_v17, %v1438_v21  ;;  %v1441_v20 = vmul.f32 %v3072_v28, %v3064_v14  ;;  %v3074_v54 = vpop.eup %3073 }
 0x2ac   :  { %v1439_v59 = vmul.f32 %v3074_v54, %v3875_v63  ;;  %v3076_v62 = vpop.eup %3075 }
 0x2ad   :  { %3077 = vtanh.f32 %v3924_v19 }
 0x2ae   :  { %v3928_v61 = vadd.f32 %v1441_v20, %v1439_v59  ;;  %3079 = vrcp.f32 %v1431_v58 }
 0x2b0   :  { %3081 = vtanh.f32 %v3928_v61 }
 0x2b7   :  { %v3078_v0 = vpop.eup %3077 }
 0x2b8   :  { %v3080_v56 = vpop.eup %3079  ;;  %v1446_v3 = vmul.f32 %v3078_v0, %v3076_v62 }
 0x2ba   :  { %v3082_v1 = vpop.eup %3081 }
 0x2bb   :  { %v1447_v6 = vmul.f32 %v3082_v1, %v3080_v56 }
 0x2bd   :  { %v1448_v8 = vpack.c.bf16 %v1447_v6, %v1446_v3 }
 0x2bf   :  { %2875 = vst [vmem:[%s4292_s6 + $0x8] sm:$0xff] %v1448_v8   ;;  %1539 = vmatmul.mubr.bf16.vlgmr.msra.gmra.mrb[8].mxu0 %v1448_v8  ;;  %1582 = vmatmul.mubr.bf16.vlgmr.msra.gmra.mrb[8].mxu1 %v1448_v8 }
 0x2c0   :  { %1709 = vmatpush1.bf16.msra.mxu0 %v3677_v22  ;;  %1752 = vmatpush1.bf16.msra.mxu1 %v3682_v24 }
 0x2c1   :  { %1710 = vmatprep.subr.bf16.mxu0 %v3680_v23  ;;  %1753 = vmatprep.subr.bf16.mxu1 %v3686_v25 }
 0x2c2   :  { %1740 = vmatprep.mubr.bf16.mxu0 %v3279_v60  ;;  %1783 = vmatprep.mubr.bf16.mxu1 %v3279_v60 }
 0x2c4   :  { %1711 = vmatpush1.bf16.msra.mxu0 %v3690_v26  ;;  %1754 = vmatpush1.bf16.msra.mxu1 %v3699_v29 }
 0x2c5   :  { %1712 = vmatprep.subr.bf16.mxu0 %v3692_v27  ;;  %1755 = vmatprep.subr.bf16.mxu1 %v3706_v31 }
 0x2c8   :  { %1713 = vmatpush1.bf16.msra.mxu0 %v3703_v30  ;;  %1756 = vmatpush1.bf16.msra.mxu1 %v3710_v33 }
 0x2c9   :  { %1714 = vmatprep.subr.bf16.mxu0 %v3708_v32  ;;  %1757 = vmatprep.subr.bf16.mxu1 %v3714_v34 }
 0x2cc   :  { %1715 = vmatpush1.bf16.msra.mxu0 %v3719_v35  ;;  %1758 = vmatpush1.bf16.msra.mxu1 %v3728_v38 }
 0x2cd   :  { %1716 = vmatprep.subr.bf16.mxu0 %v3725_v37  ;;  %1759 = vmatprep.subr.bf16.mxu1 %v3735_v40 }
 0x2d0   :  { %1717 = vmatpush1.bf16.msra.mxu0 %v3732_v39  ;;  %1760 = vmatpush1.bf16.msra.mxu1 %v3739_v42 }
 0x2d1   :  { %1718 = vmatprep.subr.bf16.mxu0 %v3737_v41  ;;  %1761 = vmatprep.subr.bf16.mxu1 %v3743_v43 }
 0x2d4   :  { %1719 = vmatpush1.bf16.msra.mxu0 %v3748_v44  ;;  %1762 = vmatpush1.bf16.msra.mxu1 %v3757_v47 }
 0x2d5   :  { %1720 = vmatprep.subr.bf16.mxu0 %v3754_v46  ;;  %1763 = vmatprep.subr.bf16.mxu1 %v3764_v49 }
 0x2d8   :  { %1721 = vmatpush1.bf16.msra.mxu0 %v3761_v48  ;;  %1764 = vmatpush1.bf16.msra.mxu1 %v3768_v51 }
 0x2d9   :  { %1722 = vmatprep.subr.bf16.mxu0 %v3766_v50  ;;  %1765 = vmatprep.subr.bf16.mxu1 %v3772_v52 }
 0x2dc   :  { %1723 = vmatpush1.bf16.msra.mxu0 %v3777_v53  ;;  %1766 = vmatpush1.bf16.msra.mxu1 %v3784_v55 }
 0x392   :  { %v1540_v22 = vpop.f32.mrb[8].mxu0  ;;  %v1583_v23 = vpop.f32.mrb[8].mxu1 }
 0x393   :  { %v2890_v24 = vadd.f32 %v1540_v22, %v3850_v4  ;;  %v1542_v25 = vpop.f32.mrb[9].mxu0  ;;  %v1585_v26 = vpop.f32.mrb[9].mxu1  ;;  %v2922_v46 = vadd.f32 %v1583_v23, %v3860_v57 }
 0x394   :  { %v2891_v27 = vadd.f32 %v1542_v25, %v3852_v5  ;;  %v1544_v29 = vpop.f32.mrb[10].mxu0  ;;  %v1587_v30 = vpop.f32.mrb[10].mxu1  ;;  %v2923_v44 = vadd.f32 %v1585_v26, %v3857_v36 }
 0x395   :  { %v2759_v31 = vmul.f32 -1.442695, %v2890_v24  ;;  %v2892_v32 = vadd.f32 %v1544_v29, %v3850_v4  ;;  %v1546_v33 = vpop.f32.mrb[11].mxu0  ;;  %v1589_v34 = vpop.f32.mrb[11].mxu1  ;;  %v2924_v2 = vadd.f32 %v1587_v30, %v3860_v57  ;;  %v3989_v29 = vld [vmem:[#allocation3 + $0x18] sm:$0xff]  ;;  %v3993_v30 = vld [vmem:[#allocation3] sm:$0xff] }
 0x396   :  { %v2761_v35 = vmul.f32 -1.442695, %v2891_v27  ;;  %v2893_v37 = vadd.f32 %v1546_v33, %v3852_v5  ;;  %v2763_v48 = vmul.f32 -1.442695, %v2923_v44  ;;  %v2925_v63 = vadd.f32 %v1589_v34, %v3857_v36  ;;  %1953 = vmatprep.subr.bf16.mxu1 %v3989_v29  ;;  %v4001_v33 = vld [vmem:[#allocation3 + $0x38] sm:$0xff]  ;;  %v4005_v34 = vld [vmem:[#allocation3 + $0x20] sm:$0xff] }
 0x397   :  { %3083 = vpow2.f32 %v2759_v31  ;;  %v2760_v39 = vmul.f32 -1.442695, %v2892_v32  ;;  %v3995_v31 = vld [vmem:[#allocation3 + $0x10] sm:$0xff]  ;;  %v3999_v32 = vld [vmem:[#allocation3 + $0x28] sm:$0xff] }
 0x398   :  { %3085 = vpow2.f32 %v2761_v35  ;;  %v2762_v41 = vmul.f32 -1.442695, %v2893_v37  ;;  %v2764_v7 = vmul.f32 -1.442695, %v2925_v63  ;;  %v4007_v35 = vld [vmem:[#allocation3 + $0x30] sm:$0xff]  ;;  %v4011_v37 = vld [vmem:[#allocation3 + $0x48] sm:$0xff] }
 0x399   :  { %3087 = vpow2.f32 %v2760_v39  ;;  %v4013_v39 = vld [vmem:[#allocation3 + $0x58] sm:$0xff]  ;;  %v4019_v44 = vld [vmem:[#allocation3 + $0x50] sm:$0xff]  ;;  %v4029_v63 = vld [vmem:[#allocation3 + $0x60] sm:$0xff] }
 0x39a   :  { %3089 = vpow2.f32 %v2762_v41  ;;  %v4017_v41 = vld [vmem:[#allocation3 + $0x40] sm:$0xff] }
 0x39b   :  { %3091 = vtanh.f32 %v2922_v46  ;;  %v4023_v46 = vld [vmem:[#allocation3 + $0x68] sm:$0xff] }
 0x39c   :  { %3093 = vpow2.f32 %v2763_v48  ;;  %v4025_v48 = vld [vmem:[#allocation3 + $0x78] sm:$0xff] }
 0x39d   :  { %3095 = vtanh.f32 %v2924_v2  ;;  %v4034_v2 = vld [vmem:[#allocation3 + $0x88] sm:$0xff] }
 0x3a1   :  { %v3084_v9 = vpop.eup %3083 }
 0x3a2   :  { %v3086_v10 = vpop.eup %3085  ;;  %v1606_v11 = vadd.f32 1.0, %v3084_v9  ;;  %v4036_v9 = vld [vmem:[#allocation3 + $0x80] sm:$0xff] }
 0x3a3   :  { %v1618_v12 = vadd.f32 1.0, %v3086_v10  ;;  %v3088_v13 = vpop.eup %3087  ;;  %v4038_v10 = vld [vmem:[#allocation3 + $0xa8] sm:$0xff] }
 0x3a4   :  { %3097 = vrcp.f32 %v1606_v11  ;;  %v1607_v14 = vadd.f32 1.0, %v3088_v13  ;;  %v3090_v15 = vpop.eup %3089  ;;  %v4045_v11 = vld [vmem:[#allocation3 + $0xa0] sm:$0xff] }
 0x3a5   :  { %3099 = vrcp.f32 %v1618_v12  ;;  %v1619_v16 = vadd.f32 1.0, %v3090_v15  ;;  %v3092_v17 = vpop.eup %3091 }
 0x3a6   :  { %3101 = vpow2.f32 %v2764_v7  ;;  %v3094_v18 = vpop.eup %3093 }
 0x3a7   :  { %3103 = vrcp.f32 %v1607_v14  ;;  %v3096_v21 = vpop.eup %3095  ;;  %v1632_v62 = vadd.f32 1.0, %v3094_v18 }
 0x3a8   :  { %3105 = vrcp.f32 %v1619_v16 }
 0x3a9   :  { %3107 = vrcp.f32 %v1632_v62 }
 0x3ae   :  { %v3098_v28 = vpop.eup %3097 }
 0x3af   :  { %v3100_v45 = vpop.eup %3099  ;;  %v1642_v20 = vmul.f32 %v3098_v28, %v3092_v17 }
 0x3b0   :  { %v3102_v54 = vpop.eup %3101  ;;  %v1640_v58 = vmul.f32 %v3100_v45, %v3924_v19 }
 0x3b1   :  { %v3104_v59 = vpop.eup %3103  ;;  %v1633_v3 = vadd.f32 1.0, %v3102_v54 }
 0x3b2   :  { %v3975_v0 = vadd.f32 %v1642_v20, %v1640_v58  ;;  %v1643_v56 = vmul.f32 %v3104_v59, %v3096_v21  ;;  %v3106_v1 = vpop.eup %3105 }
 0x3b3   :  { %v1641_v6 = vmul.f32 %v3106_v1, %v3928_v61  ;;  %v3108_v22 = vpop.eup %3107  ;;  %v3987_v61 = vld [vmem:[#allocation3 + $0x8] sm:$0xff] }
 0x3b4   :  { %3109 = vtanh.f32 %v3975_v0  ;;  %1910 = vmatprep.subr.bf16.mxu0 %v3987_v61 }
 0x3b5   :  { %v3979_v8 = vadd.f32 %v1643_v56, %v1641_v6  ;;  %3111 = vrcp.f32 %v1633_v3 }
 0x3b7   :  { %3113 = vtanh.f32 %v3979_v8 }
 0x3be   :  { %v3110_v23 = vpop.eup %3109 }
 0x3bf   :  { %v3112_v19 = vpop.eup %3111  ;;  %v1648_v25 = vmul.f32 %v3110_v23, %v3108_v22 }
 0x3c1   :  { %v3114_v24 = vpop.eup %3113 }
 0x3c2   :  { %v1649_v26 = vmul.f32 %v3114_v24, %v3112_v19 }
 0x3c4   :  { %v1650_v27 = vpack.c.bf16 %v1649_v26, %v1648_v25 }
 0x3c6   :  { %2876 = vst [vmem:[%s4292_s6 + $0x10] sm:$0xff] %v1650_v27   ;;  %1741 = vmatmul.mubr.bf16.vlgmr.msra.gmra.mrb[12].mxu0 %v1650_v27  ;;  %1784 = vmatmul.mubr.bf16.vlgmr.msra.gmra.mrb[12].mxu1 %v1650_v27 }
 0x3c7   :  { %1942 = vmatprep.mubr.bf16.mxu0 %v3279_v60  ;;  %1985 = vmatprep.mubr.bf16.mxu1 %v3279_v60 }
 0x3c8   :  { %1911 = vmatpush1.bf16.msra.mxu0 %v3993_v30  ;;  %1954 = vmatpush1.bf16.msra.mxu1 %v3995_v31 }
 0x3c9   :  { %1912 = vmatprep.subr.bf16.mxu0 %v3999_v32  ;;  %1955 = vmatprep.subr.bf16.mxu1 %v4001_v33 }
 0x3cc   :  { %1913 = vmatpush1.bf16.msra.mxu0 %v4005_v34  ;;  %1956 = vmatpush1.bf16.msra.mxu1 %v4007_v35 }
 0x3cd   :  { %1914 = vmatprep.subr.bf16.mxu0 %v4011_v37  ;;  %1957 = vmatprep.subr.bf16.mxu1 %v4013_v39 }
 0x3d0   :  { %1915 = vmatpush1.bf16.msra.mxu0 %v4017_v41  ;;  %1958 = vmatpush1.bf16.msra.mxu1 %v4019_v44 }
 0x3d1   :  { %1916 = vmatprep.subr.bf16.mxu0 %v4023_v46  ;;  %1959 = vmatprep.subr.bf16.mxu1 %v4025_v48 }
 0x3d4   :  { %1917 = vmatpush1.bf16.msra.mxu0 %v4029_v63  ;;  %1960 = vmatpush1.bf16.msra.mxu1 %v3728_v38  ;;  %v4047_v38 = vld [vmem:[#allocation3 + $0xc8] sm:$0xff] }
 0x3d5   :  { %1961 = vmatprep.subr.bf16.mxu1 %v3735_v40  ;;  %1918 = vmatprep.subr.bf16.mxu0 %v4034_v2  ;;  %v4053_v40 = vld [vmem:[#allocation3 + $0xc0] sm:$0xff] }
 0x3d8   :  { %1919 = vmatpush1.bf16.msra.mxu0 %v4036_v9  ;;  %1962 = vmatpush1.bf16.msra.mxu1 %v3739_v42 }
 0x3d9   :  { %1920 = vmatprep.subr.bf16.mxu0 %v4038_v10  ;;  %1963 = vmatprep.subr.bf16.mxu1 %v3743_v43 }
 0x3dc   :  { %1921 = vmatpush1.bf16.msra.mxu0 %v4045_v11  ;;  %1964 = vmatpush1.bf16.msra.mxu1 %v3757_v47 }
 0x3dd   :  { %1922 = vmatprep.subr.bf16.mxu0 %v4047_v38  ;;  %1965 = vmatprep.subr.bf16.mxu1 %v3764_v49 }
 0x3e0   :  { %1923 = vmatpush1.bf16.msra.mxu0 %v4053_v40  ;;  %1966 = vmatpush1.bf16.msra.mxu1 %v3768_v51 }
 0x3e1   :  { %1924 = vmatprep.subr.bf16.mxu0 %v3766_v50  ;;  %1967 = vmatprep.subr.bf16.mxu1 %v3772_v52 }
 0x3e4   :  { %1925 = vmatpush1.bf16.msra.mxu0 %v3777_v53  ;;  %1968 = vmatpush1.bf16.msra.mxu1 %v3784_v55 }
 0x3e5   :  { %2112 = vmatprep.subr.bf16.mxu0 %v3987_v61  ;;  %2155 = vmatprep.subr.bf16.mxu1 %v3989_v29 }
 0x499   :  { %v1742_v42 = vpop.f32.mrb[12].mxu0  ;;  %v1785_v43 = vpop.f32.mrb[12].mxu1 }
 0x49a   :  { %v2894_v47 = vadd.f32 %v1742_v42, %v3850_v4  ;;  %v1744_v49 = vpop.f32.mrb[13].mxu0  ;;  %v1787_v7 = vpop.f32.mrb[13].mxu1  ;;  %v2926_v21 = vadd.f32 %v1785_v43, %v3860_v57 }
 0x49b   :  { %v2895_v51 = vadd.f32 %v1744_v49, %v3852_v5  ;;  %v1746_v12 = vpop.f32.mrb[14].mxu0  ;;  %v1789_v50 = vpop.f32.mrb[14].mxu1  ;;  %v2927_v18 = vadd.f32 %v1787_v7, %v3857_v36 }
 0x49c   :  { %v2769_v13 = vmul.f32 -1.442695, %v2894_v47  ;;  %v2896_v52 = vadd.f32 %v1746_v12, %v3850_v4  ;;  %v1748_v53 = vpop.f32.mrb[15].mxu0  ;;  %v1791_v14 = vpop.f32.mrb[15].mxu1  ;;  %v2928_v20 = vadd.f32 %v1789_v50, %v3860_v57 }
 0x49d   :  { %v2771_v55 = vmul.f32 -1.442695, %v2895_v51  ;;  %v2897_v15 = vadd.f32 %v1748_v53, %v3852_v5  ;;  %v2773_v28 = vmul.f32 -1.442695, %v2927_v18  ;;  %v2929_v45 = vadd.f32 %v1791_v14, %v3857_v36  ;;  %v4106_v18 = vld [vmem:[#allocation3 + $0x98] sm:$0xff] }
 0x49e   :  { %3115 = vpow2.f32 %v2769_v13  ;;  %v2770_v16 = vmul.f32 -1.442695, %v2896_v52 }
 0x49f   :  { %3117 = vpow2.f32 %v2771_v55  ;;  %v2772_v17 = vmul.f32 -1.442695, %v2897_v15  ;;  %v2774_v62 = vmul.f32 -1.442695, %v2929_v45  ;;  %v4114_v45 = vld [vmem:[#allocation3 + $0xe8] sm:$0xff] }
 0x4a0   :  { %3119 = vpow2.f32 %v2770_v16 }
 0x4a1   :  { %3121 = vpow2.f32 %v2772_v17 }
 0x4a2   :  { %3123 = vtanh.f32 %v2926_v21  ;;  %v4108_v21 = vld [vmem:[#allocation3 + $0x90] sm:$0xff] }
 0x4a3   :  { %3125 = vpow2.f32 %v2773_v28  ;;  %v4110_v28 = vld [vmem:[#allocation3 + $0xb8] sm:$0xff] }
 0x4a4   :  { %3127 = vtanh.f32 %v2928_v20  ;;  %v4116_v20 = vld [vmem:[#allocation3 + $0xe0] sm:$0xff] }
 0x4a8   :  { %v3116_v54 = vpop.eup %3115 }
 0x4a9   :  { %v3118_v58 = vpop.eup %3117  ;;  %v1808_v59 = vadd.f32 1.0, %v3116_v54  ;;  %v4119_v54 = vld [vmem:[#allocation3 + $0xb0] sm:$0xff] }
 0x4aa   :  { %v1820_v56 = vadd.f32 1.0, %v3118_v58  ;;  %v3120_v1 = vpop.eup %3119  ;;  %v4122_v58 = vld [vmem:[#allocation3 + $0xd8] sm:$0xff] }
 0x4ab   :  { %3129 = vrcp.f32 %v1808_v59  ;;  %v1809_v3 = vadd.f32 1.0, %v3120_v1  ;;  %v3122_v6 = vpop.eup %3121  ;;  %v4128_v59 = vld [vmem:[#allocation3 + $0xd0] sm:$0xff] }
 0x4ac   :  { %3131 = vrcp.f32 %v1820_v56  ;;  %v1821_v22 = vadd.f32 1.0, %v3122_v6  ;;  %v3124_v23 = vpop.eup %3123  ;;  %v4134_v56 = vld [vmem:[#allocation3 + $0xf0] sm:$0xff] }
 0x4ad   :  { %3133 = vpow2.f32 %v2774_v62  ;;  %v3126_v19 = vpop.eup %3125  ;;  %v4130_v62 = vld [vmem:[#allocation3 + $0xf8] sm:$0xff] }
 0x4ae   :  { %3135 = vrcp.f32 %v1809_v3  ;;  %v3128_v24 = vpop.eup %3127  ;;  %v1834_v49 = vadd.f32 1.0, %v3126_v19 }
 0x4af   :  { %3137 = vrcp.f32 %v1821_v22 }
 0x4b0   :  { %3139 = vrcp.f32 %v1834_v49 }
 0x4b5   :  { %v3130_v25 = vpop.eup %3129 }
 0x4b6   :  { %v3132_v26 = vpop.eup %3131  ;;  %v1844_v27 = vmul.f32 %v3130_v25, %v3124_v23 }
 0x4b7   :  { %v3134_v42 = vpop.eup %3133  ;;  %v1842_v43 = vmul.f32 %v3132_v26, %v3975_v0 }
 0x4b8   :  { %v3136_v47 = vpop.eup %3135  ;;  %v1835_v50 = vadd.f32 1.0, %v3134_v42 }
 0x4b9   :  { %v4072_v7 = vadd.f32 %v1844_v27, %v1842_v43  ;;  %v1845_v51 = vmul.f32 %v3136_v47, %v3128_v24  ;;  %v3138_v12 = vpop.eup %3137 }
 0x4ba   :  { %v1843_v13 = vmul.f32 %v3138_v12, %v3979_v8  ;;  %v3140_v53 = vpop.eup %3139  ;;  %v4103_v8 = vld [vmem:[#allocation3 + $0x70] sm:$0xff] }
 0x4bb   :  { %3141 = vtanh.f32 %v4072_v7 }
 0x4bc   :  { %v4076_v52 = vadd.f32 %v1845_v51, %v1843_v13  ;;  %3143 = vrcp.f32 %v1835_v50 }
 0x4be   :  { %3145 = vtanh.f32 %v4076_v52 }
 0x4c5   :  { %v3142_v14 = vpop.eup %3141 }
 0x4c6   :  { %v3144_v0 = vpop.eup %3143  ;;  %v1850_v15 = vmul.f32 %v3142_v14, %v3140_v53 }
 0x4c8   :  { %v3146_v55 = vpop.eup %3145 }
 0x4c9   :  { %v1851_v16 = vmul.f32 %v3146_v55, %v3144_v0 }
 0x4cb   :  { %v1852_v17 = vpack.c.bf16 %v1851_v16, %v1850_v15 }
 0x4cd   :  { %2877 = vst [vmem:[%s4292_s6 + $0x18] sm:$0xff] %v1852_v17   ;;  %1943 = vmatmul.mubr.bf16.vlgmr.msra.gmra.mrb[16].mxu0 %v1852_v17  ;;  %1986 = vmatmul.mubr.bf16.vlgmr.msra.gmra.mrb[16].mxu1 %v1852_v17 }
 0x4ce   :  { %2113 = vmatpush1.bf16.msra.mxu0 %v3993_v30  ;;  %2156 = vmatpush1.bf16.msra.mxu1 %v3995_v31 }
 0x4cf   :  { %2114 = vmatprep.subr.bf16.mxu0 %v3999_v32  ;;  %2157 = vmatprep.subr.bf16.mxu1 %v4001_v33 }
 0x4d0   :  { %2144 = vmatprep.mubr.bf16.mxu0 %v3279_v60  ;;  %2187 = vmatprep.mubr.bf16.mxu1 %v3279_v60 }
 0x4d2   :  { %2115 = vmatpush1.bf16.msra.mxu0 %v4005_v34  ;;  %2158 = vmatpush1.bf16.msra.mxu1 %v4007_v35 }
 0x4d3   :  { %2116 = vmatprep.subr.bf16.mxu0 %v4011_v37  ;;  %2159 = vmatprep.subr.bf16.mxu1 %v4013_v39 }
 0x4d6   :  { %2117 = vmatpush1.bf16.msra.mxu0 %v4017_v41  ;;  %2160 = vmatpush1.bf16.msra.mxu1 %v4019_v44 }
 0x4d7   :  { %2118 = vmatprep.subr.bf16.mxu0 %v4023_v46  ;;  %2161 = vmatprep.subr.bf16.mxu1 %v4025_v48 }
 0x4da   :  { %2119 = vmatpush1.bf16.msra.mxu0 %v4029_v63  ;;  %2162 = vmatpush1.bf16.msra.mxu1 %v4103_v8 }
 0x4db   :  { %2120 = vmatprep.subr.bf16.mxu0 %v4034_v2  ;;  %2163 = vmatprep.subr.bf16.mxu1 %v4106_v18 }
 0x4de   :  { %2121 = vmatpush1.bf16.msra.mxu0 %v4036_v9  ;;  %2164 = vmatpush1.bf16.msra.mxu1 %v4108_v21 }
 0x4df   :  { %2122 = vmatprep.subr.bf16.mxu0 %v4038_v10  ;;  %2165 = vmatprep.subr.bf16.mxu1 %v4110_v28 }
 0x4e2   :  { %2123 = vmatpush1.bf16.msra.mxu0 %v4045_v11  ;;  %2166 = vmatpush1.bf16.msra.mxu1 %v4119_v54 }
 0x4e3   :  { %2124 = vmatprep.subr.bf16.mxu0 %v4047_v38  ;;  %2167 = vmatprep.subr.bf16.mxu1 %v4122_v58 }
 0x4e6   :  { %2125 = vmatpush1.bf16.msra.mxu0 %v4053_v40  ;;  %2168 = vmatpush1.bf16.msra.mxu1 %v4128_v59 }
 0x4e7   :  { %2126 = vmatprep.subr.bf16.mxu0 %v4114_v45  ;;  %2169 = vmatprep.subr.bf16.mxu1 %v4130_v62 }
 0x4ea   :  { %2127 = vmatpush1.bf16.msra.mxu0 %v4116_v20  ;;  %2170 = vmatpush1.bf16.msra.mxu1 %v4134_v56 }
 0x4eb   :  { %2314 = vmatprep.subr.bf16.mxu0 %v3987_v61  ;;  %2357 = vmatprep.subr.bf16.mxu1 %v3989_v29 }
 0x5a0   :  { %v1944_v1 = vpop.f32.mrb[16].mxu0  ;;  %v1987_v3 = vpop.f32.mrb[16].mxu1 }
 0x5a1   :  { %v2898_v6 = vadd.f32 %v1944_v1, %v3850_v4  ;;  %v1946_v22 = vpop.f32.mrb[17].mxu0  ;;  %v1989_v23 = vpop.f32.mrb[17].mxu1  ;;  %v2930_v13 = vadd.f32 %v1987_v3, %v3860_v57 }
 0x5a2   :  { %v2899_v19 = vadd.f32 %v1946_v22, %v3852_v5  ;;  %v1948_v24 = vpop.f32.mrb[18].mxu0  ;;  %v1991_v25 = vpop.f32.mrb[18].mxu1  ;;  %v2931_v50 = vadd.f32 %v1989_v23, %v3857_v36 }
 0x5a3   :  { %v2779_v26 = vmul.f32 -1.442695, %v2898_v6  ;;  %v2900_v27 = vadd.f32 %v1948_v24, %v3850_v4  ;;  %v1950_v42 = vpop.f32.mrb[19].mxu0  ;;  %v1993_v43 = vpop.f32.mrb[19].mxu1  ;;  %v2932_v0 = vadd.f32 %v1991_v25, %v3860_v57 }
 0x5a4   :  { %v2781_v47 = vmul.f32 -1.442695, %v2899_v19  ;;  %v2901_v49 = vadd.f32 %v1950_v42, %v3852_v5  ;;  %v2783_v53 = vmul.f32 -1.442695, %v2931_v50  ;;  %v2933_v14 = vadd.f32 %v1993_v43, %v3857_v36 }
 0x5a5   :  { %3147 = vpow2.f32 %v2779_v26  ;;  %v2780_v51 = vmul.f32 -1.442695, %v2900_v27 }
 0x5a6   :  { %3149 = vpow2.f32 %v2781_v47  ;;  %v2782_v12 = vmul.f32 -1.442695, %v2901_v49  ;;  %v2784_v17 = vmul.f32 -1.442695, %v2933_v14 }
 0x5a7   :  { %3151 = vpow2.f32 %v2780_v51 }
 0x5a8   :  { %3153 = vpow2.f32 %v2782_v12 }
 0x5a9   :  { %3155 = vtanh.f32 %v2930_v13 }
 0x5aa   :  { %3157 = vpow2.f32 %v2783_v53 }
 0x5ab   :  { %3159 = vtanh.f32 %v2932_v0 }
 0x5af   :  { %v3148_v55 = vpop.eup %3147 }
 0x5b0   :  { %v3150_v15 = vpop.eup %3149  ;;  %v2010_v16 = vadd.f32 1.0, %v3148_v55 }
 0x5b1   :  { %v2022_v1 = vadd.f32 1.0, %v3150_v15  ;;  %v3152_v6 = vpop.eup %3151 }
 0x5b2   :  { %3161 = vrcp.f32 %v2010_v16  ;;  %v2011_v22 = vadd.f32 1.0, %v3152_v6  ;;  %v3154_v23 = vpop.eup %3153 }
 0x5b3   :  { %3163 = vrcp.f32 %v2022_v1  ;;  %v2023_v3 = vadd.f32 1.0, %v3154_v23  ;;  %v3156_v19 = vpop.eup %3155 }
 0x5b4   :  { %3165 = vpow2.f32 %v2784_v17  ;;  %v3158_v24 = vpop.eup %3157 }
 0x5b5   :  { %3167 = vrcp.f32 %v2011_v22  ;;  %v3160_v25 = vpop.eup %3159  ;;  %v2036_v51 = vadd.f32 1.0, %v3158_v24 }
 0x5b6   :  { %3169 = vrcp.f32 %v2023_v3 }
 0x5b7   :  { %3171 = vrcp.f32 %v2036_v51 }
 0x5bc   :  { %v3162_v26 = vpop.eup %3161 }
 0x5bd   :  { %v3164_v27 = vpop.eup %3163  ;;  %v2046_v42 = vmul.f32 %v3162_v26, %v3156_v19 }
 0x5be   :  { %v3166_v43 = vpop.eup %3165  ;;  %v2044_v47 = vmul.f32 %v3164_v27, %v4072_v7 }
 0x5bf   :  { %v3168_v49 = vpop.eup %3167  ;;  %v2037_v53 = vadd.f32 1.0, %v3166_v43 }
 0x5c0   :  { %v4147_v12 = vadd.f32 %v2046_v42, %v2044_v47  ;;  %v2047_v50 = vmul.f32 %v3168_v49, %v3160_v25  ;;  %v3170_v13 = vpop.eup %3169 }
 0x5c1   :  { %v2045_v14 = vmul.f32 %v3170_v13, %v4076_v52  ;;  %v3172_v55 = vpop.eup %3171 }
 0x5c2   :  { %3173 = vtanh.f32 %v4147_v12 }
 0x5c3   :  { %v4151_v0 = vadd.f32 %v2047_v50, %v2045_v14  ;;  %3175 = vrcp.f32 %v2037_v53 }
 0x5c5   :  { %3177 = vtanh.f32 %v4151_v0 }
 0x5cc   :  { %v3174_v15 = vpop.eup %3173 }
 0x5cd   :  { %v3176_v7 = vpop.eup %3175  ;;  %v2052_v17 = vmul.f32 %v3174_v15, %v3172_v55 }
 0x5cf   :  { %v3178_v16 = vpop.eup %3177 }
 0x5d0   :  { %v2053_v1 = vmul.f32 %v3178_v16, %v3176_v7 }
 0x5d2   :  { %v2054_v6 = vpack.c.bf16 %v2053_v1, %v2052_v17 }
 0x5d4   :  { %2878 = vst [vmem:[%s4292_s6 + $0x20] sm:$0xff] %v2054_v6   ;;  %2145 = vmatmul.mubr.bf16.vlgmr.msra.gmra.mrb[20].mxu0 %v2054_v6  ;;  %2188 = vmatmul.mubr.bf16.vlgmr.msra.gmra.mrb[20].mxu1 %v2054_v6 }
 0x5d5   :  { %2315 = vmatpush1.bf16.msra.mxu0 %v3993_v30  ;;  %2358 = vmatpush1.bf16.msra.mxu1 %v3995_v31 }
 0x5d6   :  { %2316 = vmatprep.subr.bf16.mxu0 %v3999_v32  ;;  %2359 = vmatprep.subr.bf16.mxu1 %v4001_v33 }
 0x5d7   :  { %2346 = vmatprep.mubr.bf16.mxu0 %v3279_v60  ;;  %2389 = vmatprep.mubr.bf16.mxu1 %v3279_v60 }
 0x5d9   :  { %2317 = vmatpush1.bf16.msra.mxu0 %v4005_v34  ;;  %2360 = vmatpush1.bf16.msra.mxu1 %v4007_v35 }
 0x5da   :  { %2318 = vmatprep.subr.bf16.mxu0 %v4011_v37  ;;  %2361 = vmatprep.subr.bf16.mxu1 %v4013_v39 }
 0x5dd   :  { %2319 = vmatpush1.bf16.msra.mxu0 %v4017_v41  ;;  %2362 = vmatpush1.bf16.msra.mxu1 %v4019_v44 }
 0x5de   :  { %2320 = vmatprep.subr.bf16.mxu0 %v4023_v46  ;;  %2363 = vmatprep.subr.bf16.mxu1 %v4025_v48 }
 0x5e1   :  { %2321 = vmatpush1.bf16.msra.mxu0 %v4029_v63  ;;  %2364 = vmatpush1.bf16.msra.mxu1 %v4103_v8 }
 0x5e2   :  { %2322 = vmatprep.subr.bf16.mxu0 %v4034_v2  ;;  %2365 = vmatprep.subr.bf16.mxu1 %v4106_v18 }
 0x5e5   :  { %2323 = vmatpush1.bf16.msra.mxu0 %v4036_v9  ;;  %2366 = vmatpush1.bf16.msra.mxu1 %v4108_v21 }
 0x5e6   :  { %2324 = vmatprep.subr.bf16.mxu0 %v4038_v10  ;;  %2367 = vmatprep.subr.bf16.mxu1 %v4110_v28 }
 0x5e9   :  { %2325 = vmatpush1.bf16.msra.mxu0 %v4045_v11  ;;  %2368 = vmatpush1.bf16.msra.mxu1 %v4119_v54 }
 0x5ea   :  { %2326 = vmatprep.subr.bf16.mxu0 %v4047_v38  ;;  %2369 = vmatprep.subr.bf16.mxu1 %v4122_v58 }
 0x5ed   :  { %2327 = vmatpush1.bf16.msra.mxu0 %v4053_v40  ;;  %2370 = vmatpush1.bf16.msra.mxu1 %v4128_v59 }
 0x5ee   :  { %2328 = vmatprep.subr.bf16.mxu0 %v4114_v45  ;;  %2371 = vmatprep.subr.bf16.mxu1 %v4130_v62 }
 0x5f1   :  { %2329 = vmatpush1.bf16.msra.mxu0 %v4116_v20  ;;  %2372 = vmatpush1.bf16.msra.mxu1 %v4134_v56 }
 0x5f2   :  { %2516 = vmatprep.subr.bf16.mxu0 %v3987_v61  ;;  %2559 = vmatprep.subr.bf16.mxu1 %v3989_v29 }
 0x6a7   :  { %v2146_v52 = vpop.f32.mrb[20].mxu0  ;;  %v2189_v22 = vpop.f32.mrb[20].mxu1 }
 0x6a8   :  { %v2902_v23 = vadd.f32 %v2146_v52, %v3850_v4  ;;  %v2148_v3 = vpop.f32.mrb[21].mxu0  ;;  %v2191_v19 = vpop.f32.mrb[21].mxu1  ;;  %v2934_v13 = vadd.f32 %v2189_v22, %v3860_v57 }
 0x6a9   :  { %v2903_v24 = vadd.f32 %v2148_v3, %v3852_v5  ;;  %v2150_v25 = vpop.f32.mrb[22].mxu0  ;;  %v2193_v26 = vpop.f32.mrb[22].mxu1  ;;  %v2935_v50 = vadd.f32 %v2191_v19, %v3857_v36 }
 0x6aa   :  { %v2789_v27 = vmul.f32 -1.442695, %v2902_v23  ;;  %v2904_v42 = vadd.f32 %v2150_v25, %v3850_v4  ;;  %v2152_v43 = vpop.f32.mrb[23].mxu0  ;;  %v2195_v47 = vpop.f32.mrb[23].mxu1  ;;  %v2936_v55 = vadd.f32 %v2193_v26, %v3860_v57 }
 0x6ab   :  { %v2791_v49 = vmul.f32 -1.442695, %v2903_v24  ;;  %v2905_v61 = vadd.f32 %v2152_v43, %v3852_v5  ;;  %v2793_v53 = vmul.f32 -1.442695, %v2935_v50  ;;  %v2937_v14 = vadd.f32 %v2195_v47, %v3857_v36 }
 0x6ac   :  { %3179 = vpow2.f32 %v2789_v27  ;;  %v2790_v29 = vmul.f32 -1.442695, %v2904_v42 }
 0x6ad   :  { %3181 = vpow2.f32 %v2791_v49  ;;  %v2792_v51 = vmul.f32 -1.442695, %v2905_v61  ;;  %v2794_v17 = vmul.f32 -1.442695, %v2937_v14 }
 0x6ae   :  { %3183 = vpow2.f32 %v2790_v29 }
 0x6af   :  { %3185 = vpow2.f32 %v2792_v51 }
 0x6b0   :  { %3187 = vtanh.f32 %v2934_v13 }
 0x6b1   :  { %3189 = vpow2.f32 %v2793_v53 }
 0x6b2   :  { %3191 = vtanh.f32 %v2936_v55 }
 0x6b6   :  { %v3180_v15 = vpop.eup %3179 }
 0x6b7   :  { %v3182_v7 = vpop.eup %3181  ;;  %v2212_v16 = vadd.f32 1.0, %v3180_v15 }
 0x6b8   :  { %v2224_v1 = vadd.f32 1.0, %v3182_v7  ;;  %v3184_v6 = vpop.eup %3183 }
 0x6b9   :  { %3193 = vrcp.f32 %v2212_v16  ;;  %v2213_v52 = vadd.f32 1.0, %v3184_v6  ;;  %v3186_v23 = vpop.eup %3185 }
 0x6ba   :  { %3195 = vrcp.f32 %v2224_v1  ;;  %v2225_v22 = vadd.f32 1.0, %v3186_v23  ;;  %v3188_v3 = vpop.eup %3187 }
 0x6bb   :  { %3197 = vpow2.f32 %v2794_v17  ;;  %v3190_v19 = vpop.eup %3189 }
 0x6bc   :  { %3199 = vrcp.f32 %v2213_v52  ;;  %v3192_v24 = vpop.eup %3191  ;;  %v2238_v49 = vadd.f32 1.0, %v3190_v19 }
 0x6bd   :  { %3201 = vrcp.f32 %v2225_v22 }
 0x6be   :  { %3203 = vrcp.f32 %v2238_v49 }
 0x6c3   :  { %v3194_v25 = vpop.eup %3193 }
 0x6c4   :  { %v3196_v26 = vpop.eup %3195  ;;  %v2248_v27 = vmul.f32 %v3194_v25, %v3188_v3 }
 0x6c5   :  { %v3198_v42 = vpop.eup %3197  ;;  %v2246_v43 = vmul.f32 %v3196_v26, %v4147_v12 }
 0x6c6   :  { %v3200_v47 = vpop.eup %3199  ;;  %v2239_v50 = vadd.f32 1.0, %v3198_v42 }
 0x6c7   :  { %v4200_v61 = vadd.f32 %v2248_v27, %v2246_v43  ;;  %v2249_v29 = vmul.f32 %v3200_v47, %v3192_v24  ;;  %v3202_v51 = vpop.eup %3201 }
 0x6c8   :  { %v2247_v13 = vmul.f32 %v3202_v51, %v4151_v0  ;;  %v3204_v14 = vpop.eup %3203 }
 0x6c9   :  { %3205 = vtanh.f32 %v4200_v61 }
 0x6ca   :  { %v4204_v53 = vadd.f32 %v2249_v29, %v2247_v13  ;;  %3207 = vrcp.f32 %v2239_v50 }
 0x6cc   :  { %3209 = vtanh.f32 %v4204_v53 }
 0x6d3   :  { %v3206_v55 = vpop.eup %3205 }
 0x6d4   :  { %v3208_v12 = vpop.eup %3207  ;;  %v2254_v7 = vmul.f32 %v3206_v55, %v3204_v14 }
 0x6d6   :  { %v3210_v15 = vpop.eup %3209 }
 0x6d7   :  { %v2255_v16 = vmul.f32 %v3210_v15, %v3208_v12 }
 0x6d9   :  { %v2256_v17 = vpack.c.bf16 %v2255_v16, %v2254_v7 }
 0x6db   :  { %2879 = vst [vmem:[%s4292_s6 + $0x28] sm:$0xff] %v2256_v17   ;;  %2347 = vmatmul.mubr.bf16.vlgmr.msra.gmra.mrb[24].mxu0 %v2256_v17  ;;  %2390 = vmatmul.mubr.bf16.vlgmr.msra.gmra.mrb[24].mxu1 %v2256_v17 }
 0x6dc   :  { %2517 = vmatpush1.bf16.msra.mxu0 %v3993_v30  ;;  %2560 = vmatpush1.bf16.msra.mxu1 %v3995_v31 }
 0x6dd   :  { %2518 = vmatprep.subr.bf16.mxu0 %v3999_v32  ;;  %2561 = vmatprep.subr.bf16.mxu1 %v4001_v33 }
 0x6de   :  { %2548 = vmatprep.mubr.bf16.mxu0 %v3279_v60  ;;  %2591 = vmatprep.mubr.bf16.mxu1 %v3279_v60 }
 0x6e0   :  { %2519 = vmatpush1.bf16.msra.mxu0 %v4005_v34  ;;  %2562 = vmatpush1.bf16.msra.mxu1 %v4007_v35 }
 0x6e1   :  { %2520 = vmatprep.subr.bf16.mxu0 %v4011_v37  ;;  %2563 = vmatprep.subr.bf16.mxu1 %v4013_v39 }
 0x6e4   :  { %2521 = vmatpush1.bf16.msra.mxu0 %v4017_v41  ;;  %2564 = vmatpush1.bf16.msra.mxu1 %v4019_v44 }
 0x6e5   :  { %2522 = vmatprep.subr.bf16.mxu0 %v4023_v46  ;;  %2565 = vmatprep.subr.bf16.mxu1 %v4025_v48 }
 0x6e8   :  { %2523 = vmatpush1.bf16.msra.mxu0 %v4029_v63  ;;  %2566 = vmatpush1.bf16.msra.mxu1 %v4103_v8 }
 0x6e9   :  { %2524 = vmatprep.subr.bf16.mxu0 %v4034_v2  ;;  %2567 = vmatprep.subr.bf16.mxu1 %v4106_v18 }
 0x6ec   :  { %2525 = vmatpush1.bf16.msra.mxu0 %v4036_v9  ;;  %2568 = vmatpush1.bf16.msra.mxu1 %v4108_v21 }
 0x6ed   :  { %2526 = vmatprep.subr.bf16.mxu0 %v4038_v10  ;;  %2569 = vmatprep.subr.bf16.mxu1 %v4110_v28 }
 0x6f0   :  { %2527 = vmatpush1.bf16.msra.mxu0 %v4045_v11  ;;  %2570 = vmatpush1.bf16.msra.mxu1 %v4119_v54 }
 0x6f1   :  { %2528 = vmatprep.subr.bf16.mxu0 %v4047_v38  ;;  %2571 = vmatprep.subr.bf16.mxu1 %v4122_v58 }
 0x6f4   :  { %2529 = vmatpush1.bf16.msra.mxu0 %v4053_v40  ;;  %2572 = vmatpush1.bf16.msra.mxu1 %v4128_v59 }
 0x6f5   :  { %2530 = vmatprep.subr.bf16.mxu0 %v4114_v45  ;;  %2573 = vmatprep.subr.bf16.mxu1 %v4130_v62 }
 0x6f8   :  { %2531 = vmatpush1.bf16.msra.mxu0 %v4116_v20  ;;  %2574 = vmatpush1.bf16.msra.mxu1 %v4134_v56 }
 0x7ae   :  { %v2348_v60 = vpop.f32.mrb[24].mxu0  ;;  %v2391_v30 = vpop.f32.mrb[24].mxu1 }
 0x7af   :  { %v2906_v31 = vadd.f32 %v2348_v60, %v3850_v4  ;;  %v2350_v32 = vpop.f32.mrb[25].mxu0  ;;  %v2393_v33 = vpop.f32.mrb[25].mxu1  ;;  %v2938_v11 = vadd.f32 %v2391_v30, %v3860_v57 }
 0x7b0   :  { %v2907_v34 = vadd.f32 %v2350_v32, %v3852_v5  ;;  %v2352_v35 = vpop.f32.mrb[26].mxu0  ;;  %v2395_v37 = vpop.f32.mrb[26].mxu1  ;;  %v2939_v10 = vadd.f32 %v2393_v33, %v3857_v36 }
 0x7b1   :  { %v2799_v39 = vmul.f32 -1.442695, %v2906_v31  ;;  %v2908_v41 = vadd.f32 %v2352_v35, %v3850_v4  ;;  %v2354_v44 = vpop.f32.mrb[27].mxu0  ;;  %v2397_v46 = vpop.f32.mrb[27].mxu1  ;;  %v2940_v8 = vadd.f32 %v2395_v37, %v3860_v57 }
 0x7b2   :  { %v2801_v48 = vmul.f32 -1.442695, %v2907_v34  ;;  %v2909_v63 = vadd.f32 %v2354_v44, %v3852_v5  ;;  %v2803_v38 = vmul.f32 -1.442695, %v2939_v10  ;;  %v2941_v40 = vadd.f32 %v2397_v46, %v3857_v36 }
 0x7b3   :  { %3211 = vpow2.f32 %v2799_v39  ;;  %v2800_v2 = vmul.f32 -1.442695, %v2908_v41 }
 0x7b4   :  { %3213 = vpow2.f32 %v2801_v48  ;;  %v2802_v9 = vmul.f32 -1.442695, %v2909_v63  ;;  %v2804_v45 = vmul.f32 -1.442695, %v2941_v40 }
 0x7b5   :  { %3215 = vpow2.f32 %v2800_v2 }
 0x7b6   :  { %3217 = vpow2.f32 %v2802_v9 }
 0x7b7   :  { %3219 = vtanh.f32 %v2938_v11 }
 0x7b8   :  { %3221 = vpow2.f32 %v2803_v38 }
 0x7b9   :  { %3223 = vtanh.f32 %v2940_v8 }
 0x7bd   :  { %v3212_v18 = vpop.eup %3211 }
 0x7be   :  { %v3214_v21 = vpop.eup %3213  ;;  %v2414_v28 = vadd.f32 1.0, %v3212_v18 }
 0x7bf   :  { %v2426_v20 = vadd.f32 1.0, %v3214_v21  ;;  %v3216_v54 = vpop.eup %3215 }
 0x7c0   :  { %3225 = vrcp.f32 %v2414_v28  ;;  %v2415_v58 = vadd.f32 1.0, %v3216_v54  ;;  %v3218_v59 = vpop.eup %3217 }
 0x7c1   :  { %3227 = vrcp.f32 %v2426_v20  ;;  %v2427_v62 = vadd.f32 1.0, %v3218_v59  ;;  %v3220_v56 = vpop.eup %3219 }
 0x7c2   :  { %3229 = vpow2.f32 %v2804_v45  ;;  %v3222_v0 = vpop.eup %3221 }
 0x7c3   :  { %3231 = vrcp.f32 %v2415_v58  ;;  %v3224_v1 = vpop.eup %3223  ;;  %v2440_v24 = vadd.f32 1.0, %v3222_v0 }
 0x7c4   :  { %3233 = vrcp.f32 %v2427_v62 }
 0x7c5   :  { %3235 = vrcp.f32 %v2440_v24 }
 0x7ca   :  { %v3226_v6 = vpop.eup %3225 }
 0x7cb   :  { %v3228_v52 = vpop.eup %3227  ;;  %v2450_v23 = vmul.f32 %v3226_v6, %v3220_v56 }
 0x7cc   :  { %v3230_v22 = vpop.eup %3229  ;;  %v2448_v3 = vmul.f32 %v3228_v52, %v4200_v61 }
 0x7cd   :  { %v3232_v19 = vpop.eup %3231  ;;  %v2441_v42 = vadd.f32 1.0, %v3230_v22 }
 0x7ce   :  { %v4251_v25 = vadd.f32 %v2450_v23, %v2448_v3  ;;  %v2451_v26 = vmul.f32 %v3232_v19, %v3224_v1  ;;  %v3234_v27 = vpop.eup %3233 }
 0x7cf   :  { %v2449_v43 = vmul.f32 %v3234_v27, %v4204_v53  ;;  %v3236_v49 = vpop.eup %3235 }
 0x7d0   :  { %3237 = vtanh.f32 %v4251_v25 }
 0x7d1   :  { %v4255_v47 = vadd.f32 %v2451_v26, %v2449_v43  ;;  %3239 = vrcp.f32 %v2441_v42 }
 0x7d3   :  { %3241 = vtanh.f32 %v4255_v47 }
 0x7da   :  { %v3238_v29 = vpop.eup %3237 }
 0x7db   :  { %v3240_v61 = vpop.eup %3239  ;;  %v2456_v50 = vmul.f32 %v3238_v29, %v3236_v49 }
 0x7dd   :  { %v3242_v51 = vpop.eup %3241 }
 0x7de   :  { %v2457_v13 = vmul.f32 %v3242_v51, %v3240_v61 }
 0x7e0   :  { %v2458_v14 = vpack.c.bf16 %v2457_v13, %v2456_v50 }
 0x7e2   :  { %2880 = vst [vmem:[%s4292_s6 + $0x30] sm:$0xff] %v2458_v14   ;;  %2549 = vmatmul.mubr.bf16.vlgmr.msra.gmra.mrb[28].mxu0 %v2458_v14  ;;  %2592 = vmatmul.mubr.bf16.vlgmr.msra.gmra.mrb[28].mxu1 %v2458_v14 }
 0x8b5   :  { %v2550_v53 = vpop.f32.mrb[28].mxu0  ;;  %v2593_v55 = vpop.f32.mrb[28].mxu1 }
 0x8b6   :  { %v2910_v12 = vadd.f32 %v2550_v53, %v3850_v4  ;;  %v2552_v15 = vpop.f32.mrb[29].mxu0  ;;  %v2595_v7 = vpop.f32.mrb[29].mxu1  ;;  %v2942_v44 = vadd.f32 %v2593_v55, %v3860_v57 }
 0x8b7   :  { %v2911_v16 = vadd.f32 %v2552_v15, %v3852_v5  ;;  %v2554_v17 = vpop.f32.mrb[30].mxu0  ;;  %v2597_v60 = vpop.f32.mrb[30].mxu1  ;;  %v2943_v41 = vadd.f32 %v2595_v7, %v3857_v36 }
 0x8b8   :  { %v2809_v30 = vmul.f32 -1.442695, %v2910_v12  ;;  %v2912_v31 = vadd.f32 %v2554_v17, %v3850_v4  ;;  %v2556_v32 = vpop.f32.mrb[31].mxu0  ;;  %v2599_v33 = vpop.f32.mrb[31].mxu1  ;;  %v2944_v4 = vadd.f32 %v2597_v60, %v3860_v57 }
 0x8b9   :  { %v2811_v34 = vmul.f32 -1.442695, %v2911_v16  ;;  %v2913_v35 = vadd.f32 %v2556_v32, %v3852_v5  ;;  %v2813_v46 = vmul.f32 -1.442695, %v2943_v41  ;;  %v2945_v48 = vadd.f32 %v2599_v33, %v3857_v36 }
 0x8ba   :  { %3243 = vpow2.f32 %v2809_v30  ;;  %v2810_v37 = vmul.f32 -1.442695, %v2912_v31 }
 0x8bb   :  { %3245 = vpow2.f32 %v2811_v34  ;;  %v2812_v39 = vmul.f32 -1.442695, %v2913_v35  ;;  %v2814_v5 = vmul.f32 -1.442695, %v2945_v48 }
 0x8bc   :  { %3247 = vpow2.f32 %v2810_v37 }
 0x8bd   :  { %3249 = vpow2.f32 %v2812_v39 }
 0x8be   :  { %3251 = vtanh.f32 %v2942_v44 }
 0x8bf   :  { %3253 = vpow2.f32 %v2813_v46 }
 0x8c0   :  { %3255 = vtanh.f32 %v2944_v4 }
 0x8c4   :  { %v3244_v63 = vpop.eup %3243 }
 0x8c5   :  { %v3246_v2 = vpop.eup %3245  ;;  %v2616_v9 = vadd.f32 1.0, %v3244_v63 }
 0x8c6   :  { %v2628_v10 = vadd.f32 1.0, %v3246_v2  ;;  %v3248_v11 = vpop.eup %3247 }
 0x8c7   :  { %3257 = vrcp.f32 %v2616_v9  ;;  %v2617_v38 = vadd.f32 1.0, %v3248_v11  ;;  %v3250_v40 = vpop.eup %3249 }
 0x8c8   :  { %3259 = vrcp.f32 %v2628_v10  ;;  %v2629_v8 = vadd.f32 1.0, %v3250_v40  ;;  %v3252_v36 = vpop.eup %3251 }
 0x8c9   :  { %3261 = vpow2.f32 %v2814_v5  ;;  %v3254_v18 = vpop.eup %3253 }
 0x8ca   :  { %3263 = vrcp.f32 %v2617_v38  ;;  %v3256_v57 = vpop.eup %3255  ;;  %v2642_v20 = vadd.f32 1.0, %v3254_v18 }
 0x8cb   :  { %3265 = vrcp.f32 %v2629_v8 }
 0x8cc   :  { %3267 = vrcp.f32 %v2642_v20 }
 0x8d1   :  { %v3258_v21 = vpop.eup %3257 }
 0x8d2   :  { %v3260_v28 = vpop.eup %3259  ;;  %v2652_v45 = vmul.f32 %v3258_v21, %v3252_v36 }
 0x8d3   :  { %v3262_v54 = vpop.eup %3261  ;;  %v2650_v58 = vmul.f32 %v3260_v28, %v4251_v25 }
 0x8d4   :  { %v3264_v59 = vpop.eup %3263  ;;  %v2643_v1 = vadd.f32 1.0, %v3262_v54 }
 0x8d5   :  { %v2654_v62 = vadd.f32 %v2652_v45, %v2650_v58  ;;  %v2653_v56 = vmul.f32 %v3264_v59, %v3256_v57  ;;  %v3266_v0 = vpop.eup %3265 }
 0x8d6   :  { %v2651_v6 = vmul.f32 %v3266_v0, %v4255_v47  ;;  %v3268_v23 = vpop.eup %3267 }
 0x8d7   :  { %3269 = vtanh.f32 %v2654_v62  ;;  %2684 = vst [vmem:[%s4294_s8] sm:$0xff] %v2654_v62 }
 0x8d8   :  { %v2655_v52 = vadd.f32 %v2653_v56, %v2651_v6  ;;  %3271 = vrcp.f32 %v2643_v1 }
 0x8da   :  { %3273 = vtanh.f32 %v2655_v52  ;;  %2685 = vst [vmem:[%s4294_s8 + $0x8] sm:$0xff] %v2655_v52 }
 0x8e1   :  { %v3270_v22 = vpop.eup %3269 }
 0x8e2   :  { %v2658_v3 = vmul.f32 %v3270_v22, %v3268_v23  ;;  %v3272_v19 = vpop.eup %3271 }
 0x8e4   :  { %v3274_v24 = vpop.eup %3273 }
 0x8e5   :  { %v2659_v25 = vmul.f32 %v3274_v24, %v3272_v19 }
 0x8e7   :  { %v2660_v26 = vpack.c.bf16 %v2659_v25, %v2658_v3 }
 0x8e9   :  { %2881 = vst [vmem:[%s4292_s6 + $0x38] sm:$0xff] %v2660_v26   ;;  %v2678_v27 = vunpack.c.l.bf16 %v2660_v26  ;;  %v2679_v42 = vunpack.c.h.bf16 %v2660_v26 }
 0x8eb   :  { %2680 = vst [vmem:[%s4293_s7] sm:$0xff] %v2678_v27  ;;  %2681 = vst [vmem:[%s4293_s7 + $0x8] sm:$0xff] %v2679_v42 }

</bundles_post_ra>
